<compile_context>
chip_gen: v7x
topology: tpu7x:2x2x1
jax: 0.10.0
libtpu: 0.0.40
codegen_flags: <defaults>
</compile_context>

<pallas_src>
import functools

import jax
import jax.numpy as jnp
import numpy as np
from jax.experimental import pallas as pl
from jax.experimental.pallas import tpu as pltpu


def _round_up(n, m):
    return ((n + m - 1) // m) * m


def _rnn_kernel(p_ref, whh0_ref, wr_in_ref, wr_hh_ref, b_ref, wo_ref, bo_ref,
                out_ref, h_state, act,
                *, num_layers, time_chunk, seq_len, nslots):
    """Grid = (batch_blocks, time_chunks); the time axis is sequential
    ("arbitrary") and carries the per-layer hidden state in `h_state`.

    Per chunk the loop nest is layer-outer / time-inner: each layer's W_hh is
    loaded once and reused for all `time_chunk` recurrent matmuls, and each
    upper layer's input contribution (from the layer below) is computed for
    the whole chunk with a single (time_chunk*bb, H) x (H, H) matmul."""
    c = pl.program_id(1)  # time-chunk index (inner, "arbitrary")

    @pl.when(c == 0)
    def _init():
        h_state[...] = jnp.zeros_like(h_state)

    bb = h_state.shape[1]
    hpad = h_state.shape[2]
    cdt = whh0_ref.dtype                    # MXU operand dtype (f32 or bf16)
    needs_mask = (seq_len % time_chunk) != 0
    if needs_mask:                          # real timesteps in this chunk
        valid = jnp.minimum(time_chunk, seq_len - c * time_chunk)

    for layer in range(num_layers):         # static unroll over layers
        # Single hoisted weight/bias read per layer (reused across the chunk).
        w_hh = whh0_ref[...] if layer == 0 else wr_hh_ref[layer - 1]
        bias = b_ref[layer]                 # (1, hpad) f32, sublane-broadcast add
        write_act = layer < num_layers - 1  # only lower layers feed another layer

        if layer > 0:
            # Chunk-wide input projection: one big-M matmul reusing W_in across
            # all time_chunk steps (the time-parallel part of the layer).
            src = ((layer - 1) % nslots) * time_chunk
            acts = act[pl.ds(src, time_chunk)]           # (tc, bb, hpad) cdt
            proj = jnp.dot(
                acts.reshape(time_chunk * bb, hpad), wr_in_ref[layer - 1],
                preferred_element_type=jnp.float32,
            ).reshape(time_chunk, bb, hpad)

        # TODO(synk): on v6e, explicit MXU driving (pltpu.matmul_push_rhs /
        # matmul_acc_lhs / matmul_pop) could pin w_hh in MXU staging for the
        # whole chunk; here we rely on Mosaic reusing the shared RHS.
        dst = (layer % nslots) * time_chunk
        h = h_state[layer]                               # (bb, hpad) f32
        for t in range(time_chunk):                      # static unroll
            p_t = p_ref[t] if layer == 0 else proj[t]
            h_new = jnp.tanh(
                jnp.dot(h.astype(cdt), w_hh, preferred_element_type=jnp.float32)
                + p_t + bias)
            if needs_mask:
                h_new = jnp.where(t < valid, h_new, h)   # freeze padded steps
            h = h_new
            if write_act:
                act[dst + t] = h.astype(cdt)
        h_state[layer] = h

    # Only the last timestep's top-layer state is projected, matching
    # `output = self.linear(output); output[:, -1, :]`.
    @pl.when(c == pl.num_programs(1) - 1)
    def _finalize():
        out_ref[...] = (
            jnp.dot(h_state[num_layers - 1].astype(cdt), wo_ref[...],
                    preferred_element_type=jnp.float32)
            + bo_ref[...]
        ).astype(out_ref.dtype)


def _const_spec(shape):
    """Full-array, grid-invariant operand.  Single-buffered when the installed
    jax supports pipeline_mode (a constant index_map means double-buffering
    only doubles the VMEM held by weights)."""
    n = len(shape)
    imap = lambda bi, ci, _n=n: (0,) * _n
    try:
        return pl.BlockSpec(shape, imap, pipeline_mode=pl.Buffered(1))
    except Exception:  # older jax: no pipeline_mode / Buffered — fall back
        return pl.BlockSpec(shape, imap)


def model_todo_forward(x, params, *, num_layers, hidden_size, output_size,
                       param_dtype=jnp.float32, batch_block=None,
                       time_chunk=None, vmem_limit_bytes=None):
    """x: (batch, seq, feature) f32 (batch_first, like the PyTorch module).
    params are raw, unpadded (in_features, out_features)-layout weights.
    Returns (batch, output_size) f32."""
    w_ih0, w_ih_rest, w_hh, b, w_out, b_out = params
    B, S, F = x.shape
    H, O, L = hidden_size, output_size, num_layers

    # Lane/sublane-dense padded shapes: last dim -> x128, second-to-last -> x8.
    B_pad = _round_up(B, 8)
    H_pad = _round_up(H, 128)
    O_pad = _round_up(O, 128)

    # Batch block: fill the MXU M dimension (~256 rows on v6e/v7x, ~128 on
    # v5e).  On v7x pass batch_block = B_pad // 2 (when B_pad >= 256) so the
    # "parallel" grid axis spans both TensorCores.
    if batch_block is None:
        target = 256
        if B_pad <= target:
            bb = B_pad
        else:
            bb = max(d for d in range(8, target + 1, 8) if B_pad % d == 0)
    else:
        bb = batch_block
    assert bb % 8 == 0 and B_pad % bb == 0
    nb = B_pad // bb

    if time_chunk is None:
        if S <= 32:
            time_chunk = S
        else:
            time_chunk = next((c for c in (32, 16, 8) if S % c == 0), 32)
    nc = pl.cdiv(S, time_chunk)
    S_pad = nc * time_chunk  # partial last chunk is masked inside the kernel

    # Layer-0 input projection hoisted out of the recurrence: one big XLA
    # matmul over all (B, S) rows, streamed into the kernel time-major.
    proj0 = jnp.einsum("bsf,fh->bsh", x, w_ih0)               # (B, S, H) f32
    p = jnp.transpose(proj0, (1, 0, 2))                       # (S, B, H)
    p = jnp.pad(p, ((0, S_pad - S), (0, B_pad - B), (0, H_pad - H)))
    p = p.astype(param_dtype)  # bf16 halves the only S-scaling HBM->VMEM DMA

    def pad2(a, r, c):
        return jnp.pad(a, ((0, r - a.shape[0]), (0, c - a.shape[1])))

    # Zero-padded weights: padded hidden lanes stay exactly 0 through the
    # recurrence, so the result is exact after slicing.
    whh0 = pad2(w_hh[0], H_pad, H_pad).astype(param_dtype)     # (H_pad, H_pad)
    if L > 1:
        wr_in = jnp.stack([pad2(w_ih_rest[l - 1], H_pad, H_pad)
                           for l in range(1, L)]).astype(param_dtype)
        wr_hh = jnp.stack([pad2(w_hh[l], H_pad, H_pad)
                           for l in range(1, L)]).astype(param_dtype)
    else:  # tiny dummies (never read); don't DMA/buffer full-size unused weights
        wr_in = jnp.zeros((1, 8, 128), param_dtype)
        wr_hh = jnp.zeros((1, 8, 128), param_dtype)
    b_p = jnp.pad(b, ((0, 0), (0, H_pad - H)))[:, None, :]     # (L, 1, H_pad) f32
    w_out_p = pad2(w_out, H_pad, O_pad).astype(param_dtype)    # (H_pad, O_pad)
    b_out_p = jnp.pad(b_out, (0, O_pad - O))[None, :]          # (1, O_pad) f32

    # Inter-layer activation buffer: ping-pong (2 slots) only when a middle
    # layer both reads and writes it (L > 2); flattened to 3-D for cheap
    # static first-axis indexing.
    nslots = 1 if L <= 2 else 2
    act_shape = (nslots * time_chunk, bb, H_pad) if L > 1 else (1, 8, 128)

    kernel = functools.partial(_rnn_kernel, num_layers=L,
                               time_chunk=time_chunk, seq_len=S, nslots=nslots)

    # VMEM budget (v7x: 64 MiB physical / 32 MiB default scoped).
    bpe = jnp.dtype(param_dtype).itemsize
    est = (2 * time_chunk * bb * H_pad * bpe                       # streamed proj0
           + (whh0.size + wr_in.size + wr_hh.size + w_out_p.size) * bpe
           + (b_p.size + b_out_p.size) * 4
           + L * bb * H_pad * 4                                    # h_state
           + (nslots * time_chunk * bb * H_pad * bpe if L > 1 else 4096)
           + 2 * bb * O_pad * 4)                                   # output block
    cp_kwargs = dict(dimension_semantics=("parallel", "arbitrary"))
    if vmem_limit_bytes is None and est > 28 * 1024 * 1024:
        # Leave pipelining headroom; cap lower (e.g. 56 MiB) when targeting v7x.
        vmem_limit_bytes = min(int(est * 1.5), 100 * 1024 * 1024)
    if vmem_limit_bytes is not None:
        cp_kwargs["vmem_limit_bytes"] = vmem_limit_bytes

    out_padded = pl.pallas_call(
        kernel,
        out_shape=jax.ShapeDtypeStruct((B_pad, O_pad), jnp.float32),
        grid_spec=pltpu.PrefetchScalarGridSpec(
            num_scalar_prefetch=0,
            grid=(nb, nc),
            in_specs=[
                pl.BlockSpec((time_chunk, bb, H_pad),
                             lambda bi, ci: (ci, bi, 0)),  # streamed layer-0 proj
                _const_spec(whh0.shape),                   # layer-0 W_hh
                _const_spec(wr_in.shape),                  # layers 1..L-1 W_in
                _const_spec(wr_hh.shape),                  # layers 1..L-1 W_hh
                _const_spec(b_p.shape),                    # per-layer b_ih + b_hh
                _const_spec(w_out_p.shape),                # Linear weight
                _const_spec(b_out_p.shape),                # Linear bias
            ],
            out_specs=pl.BlockSpec((bb, O_pad), lambda bi, ci: (bi, 0)),
            scratch_shapes=[pltpu.VMEM((L, bb, H_pad), jnp.float32),
                            pltpu.VMEM(act_shape, param_dtype)],
        ),
        compiler_params=pltpu.CompilerParams(**cp_kwargs),
    )(p, whh0, wr_in, wr_hh, b_p, w_out_p, b_out_p)

    return out_padded[:B, :O]


def reference_forward(x, params, *, num_layers, hidden_size):
    """Pure-JAX reference identical to PyTorch nn.RNN(batch_first)+Linear, last step."""
    w_ih0, w_ih_rest, w_hh, b, w_out, b_out = params
    B, S, F = x.shape
    h = [jnp.zeros((B, hidden_size), jnp.float32) for _ in range(num_layers)]
    last = None
    for t in range(S):
        inp = x[:, t, :]
        for layer in range(num_layers):
            w_in = w_ih0 if layer == 0 else w_ih_rest[layer - 1]
            h[layer] = jnp.tanh(inp @ w_in + h[layer] @ w_hh[layer] + b[layer])
            inp = h[layer]
        last = inp
    return last @ w_out + b_out


if __name__ == "__main__":
    # Small, deterministic shapes consistent with the module.
    B, S = 2, 8                 # batch, sequence length
    F, H, L, O = 4, 32, 2, 4    # feature_size, hidden_size, num_layers, output_size

    key = jax.random.PRNGKey(0)
    ks = jax.random.split(key, 8)
    scale = 1.0 / np.sqrt(H)
    u = lambda k, shp: jax.random.uniform(k, shp, jnp.float32, -scale, scale)

    # PyTorch-like uniform init, weights in (in_features, out_features) layout,
    # per-layer biases b_ih + b_hh pre-summed.
    w_ih0 = u(ks[0], (F, H))
    w_ih_rest = u(ks[1], (max(L - 1, 1), H, H))
    w_hh = u(ks[2], (L, H, H))
    b = u(ks[3], (L, H)) + u(ks[4], (L, H))
    w_out = u(ks[5], (H, O))
    b_out = u(ks[6], (O,))
    params = (w_ih0, w_ih_rest, w_hh, b, w_out, b_out)

    x = jax.random.normal(ks[7], (B, S, F), jnp.float32)

    ref = reference_forward(x, params, num_layers=L, hidden_size=H)

    # f32 weights: tight match with the module semantics (validation path).
    out_f32 = jax.block_until_ready(
        model_todo_forward(x, params, num_layers=L, hidden_size=H,
                           output_size=O, param_dtype=jnp.float32))
    np.testing.assert_allclose(np.asarray(out_f32), np.asarray(ref),
                               rtol=1e-5, atol=1e-5)

    # Partial-last-chunk path (S not divisible by time_chunk): masked steps.
    out_part = jax.block_until_ready(
        model_todo_forward(x, params, num_layers=L, hidden_size=H,
                           output_size=O, param_dtype=jnp.float32,
                           time_chunk=3))
    np.testing.assert_allclose(np.asarray(out_part), np.asarray(ref),
                               rtol=1e-5, atol=1e-5)

    # bf16 MXU operands (fast path on v5e/v6e/v7x); tanh/bias/accum stay f32.
    out_bf16 = jax.block_until_ready(
        model_todo_forward(x, params, num_layers=L, hidden_size=H,
                           output_size=O, param_dtype=jnp.bfloat16))
    np.testing.assert_allclose(np.asarray(out_bf16), np.asarray(ref),
                               rtol=5e-2, atol=5e-2)

    print("KERNEL_OK")
</pallas_src>

<mosaic_0001>
module attributes {stable_mosaic.version = 11 : i64} {
  func.func @_rnn_kernel(%arg0: i32, %arg1: i32, %arg2: memref<8x8x128xf32, #tpu.memory_space<vmem>>, %arg3: memref<128x128xf32, #tpu.memory_space<vmem>>, %arg4: memref<1x128x128xf32, #tpu.memory_space<vmem>>, %arg5: memref<1x128x128xf32, #tpu.memory_space<vmem>>, %arg6: memref<2x1x128xf32, #tpu.memory_space<vmem>>, %arg7: memref<128x128xf32, #tpu.memory_space<vmem>>, %arg8: memref<1x128xf32, #tpu.memory_space<vmem>>, %arg9: memref<8x128xf32, #tpu.memory_space<vmem>>, %arg10: memref<2x8x128xf32, #tpu.memory_space<vmem>>, %arg11: memref<8x8x128xf32, #tpu.memory_space<vmem>>) attributes {dimension_semantics = [#tpu.dimension_semantics<parallel>, #tpu.dimension_semantics<arbitrary>], iteration_bounds = array<i64: 1, 1>, scalar_prefetch = 0 : i64, scratch_operands = 2 : i64, tpu.core_type = #tpu.core_type<tc>, window_params = [{transform_indices = @transform_0, window_bounds = array<i64: 8, 8, 128>}, {pipeline_mode = #tpu.pipeline_mode<synchronous>, transform_indices = @transform_1, window_bounds = array<i64: 128, 128>}, {pipeline_mode = #tpu.pipeline_mode<synchronous>, transform_indices = @transform_2, window_bounds = array<i64: 1, 128, 128>}, {pipeline_mode = #tpu.pipeline_mode<synchronous>, transform_indices = @transform_3, window_bounds = array<i64: 1, 128, 128>}, {pipeline_mode = #tpu.pipeline_mode<synchronous>, transform_indices = @transform_4, window_bounds = array<i64: 2, 1, 128>}, {pipeline_mode = #tpu.pipeline_mode<synchronous>, transform_indices = @transform_5, window_bounds = array<i64: 128, 128>}, {pipeline_mode = #tpu.pipeline_mode<synchronous>, transform_indices = @transform_6, window_bounds = array<i64: 1, 128>}, {transform_indices = @transform_7, window_bounds = array<i64: 8, 128>}]} {
    %c0_i32 = arith.constant 0 : i32
    %0 = arith.cmpi eq, %arg1, %c0_i32 : i32
    %1 = arith.extui %0 : i1 to i32
    %c0_i32_0 = arith.constant 0 : i32
    %2 = arith.cmpi ne, %1, %c0_i32_0 : i32
    scf.if %2 {
      %cst_88 = arith.constant 0.000000e+00 : f32
      %165 = vector.broadcast %cst_88 : f32 to vector<2x8x128xf32>
      %c0_89 = arith.constant 0 : index
      %c0_90 = arith.constant 0 : index
      %c0_91 = arith.constant 0 : index
      %166 = vector.load %arg10[%c0_89, %c0_90, %c0_91] : memref<2x8x128xf32, #tpu.memory_space<vmem>>, vector<2x8x128xf32>
      tpu.vector_store %arg10[%c0_89, %c0_90, %c0_91], %165 {strides = array<i32>} : memref<2x8x128xf32, #tpu.memory_space<vmem>>, vector<2x8x128xf32>,
    } else {
    }
    %c0 = arith.constant 0 : index
    %c0_1 = arith.constant 0 : index
    %3 = vector.load %arg3[%c0, %c0_1] : memref<128x128xf32, #tpu.memory_space<vmem>>, vector<128x128xf32>
    %c0_2 = arith.constant 0 : index
    %c0_3 = arith.constant 0 : index
    %c0_4 = arith.constant 0 : index
    %4 = vector.load %arg6[%c0_2, %c0_3, %c0_4] : memref<2x1x128xf32, #tpu.memory_space<vmem>>, vector<1x1x128xf32>
    %5 = vector.shape_cast %4 : vector<1x1x128xf32> to vector<1x128xf32>
    %c0_5 = arith.constant 0 : index
    %c0_6 = arith.constant 0 : index
    %c0_7 = arith.constant 0 : index
    %6 = vector.load %arg10[%c0_5, %c0_6, %c0_7] : memref<2x8x128xf32, #tpu.memory_space<vmem>>, vector<1x8x128xf32>
    %7 = vector.shape_cast %6 : vector<1x8x128xf32> to vector<8x128xf32>
    %c0_8 = arith.constant 0 : index
    %c0_9 = arith.constant 0 : index
    %c0_10 = arith.constant 0 : index
    %8 = vector.load %arg2[%c0_8, %c0_9, %c0_10] : memref<8x8x128xf32, #tpu.memory_space<vmem>>, vector<1x8x128xf32>
    %9 = vector.shape_cast %8 : vector<1x8x128xf32> to vector<8x128xf32>
    %cst = arith.constant dense<0.000000e+00> : vector<8x128xf32>
    %10 = tpu.matmul %7, %3, %cst {dimension_numbers = #tpu.dot_dimension_numbers<[1], [0], [0], [1], [0, 0, 1, 1], [], []>} : vector<8x128xf32>, vector<128x128xf32>, vector<8x128xf32> -> vector<8x128xf32>
    %11 = arith.addf %10, %9 : vector<8x128xf32>
    %12 = vector.broadcast %5 : vector<1x128xf32> to vector<8x128xf32>
    %13 = arith.addf %11, %12 : vector<8x128xf32>
    %14 = math.tanh %13 : vector<8x128xf32>
    %c0_11 = arith.constant 0 : index
    %c0_12 = arith.constant 0 : index
    %c0_13 = arith.constant 0 : index
    %15 = vector.load %arg11[%c0_11, %c0_12, %c0_13] : memref<8x8x128xf32, #tpu.memory_space<vmem>>, vector<1x8x128xf32>
    %16 = vector.shape_cast %15 : vector<1x8x128xf32> to vector<8x128xf32>
    %17 = vector.shape_cast %14 : vector<8x128xf32> to vector<1x8x128xf32>
    tpu.vector_store %arg11[%c0_11, %c0_12, %c0_13], %17 {strides = array<i32>} : memref<8x8x128xf32, #tpu.memory_space<vmem>>, vector<1x8x128xf32>,
    %c1 = arith.constant 1 : index
    %c0_14 = arith.constant 0 : index
    %c0_15 = arith.constant 0 : index
    %18 = vector.load %arg2[%c1, %c0_14, %c0_15] : memref<8x8x128xf32, #tpu.memory_space<vmem>>, vector<1x8x128xf32>
    %19 = vector.shape_cast %18 : vector<1x8x128xf32> to vector<8x128xf32>
    %cst_16 = arith.constant dense<0.000000e+00> : vector<8x128xf32>
    %20 = tpu.matmul %14, %3, %cst_16 {dimension_numbers = #tpu.dot_dimension_numbers<[1], [0], [0], [1], [0, 0, 1, 1], [], []>} : vector<8x128xf32>, vector<128x128xf32>, vector<8x128xf32> -> vector<8x128xf32>
    %21 = arith.addf %20, %19 : vector<8x128xf32>
    %22 = vector.broadcast %5 : vector<1x128xf32> to vector<8x128xf32>
    %23 = arith.addf %21, %22 : vector<8x128xf32>
    %24 = math.tanh %23 : vector<8x128xf32>
    %c1_17 = arith.constant 1 : index
    %c0_18 = arith.constant 0 : index
    %c0_19 = arith.constant 0 : index
    %25 = vector.load %arg11[%c1_17, %c0_18, %c0_19] : memref<8x8x128xf32, #tpu.memory_space<vmem>>, vector<1x8x128xf32>
    %26 = vector.shape_cast %25 : vector<1x8x128xf32> to vector<8x128xf32>
    %27 = vector.shape_cast %24 : vector<8x128xf32> to vector<1x8x128xf32>
    tpu.vector_store %arg11[%c1_17, %c0_18, %c0_19], %27 {strides = array<i32>} : memref<8x8x128xf32, #tpu.memory_space<vmem>>, vector<1x8x128xf32>,
    %c2 = arith.constant 2 : index
    %c0_20 = arith.constant 0 : index
    %c0_21 = arith.constant 0 : index
    %28 = vector.load %arg2[%c2, %c0_20, %c0_21] : memref<8x8x128xf32, #tpu.memory_space<vmem>>, vector<1x8x128xf32>
    %29 = vector.shape_cast %28 : vector<1x8x128xf32> to vector<8x128xf32>
    %cst_22 = arith.constant dense<0.000000e+00> : vector<8x128xf32>
    %30 = tpu.matmul %24, %3, %cst_22 {dimension_numbers = #tpu.dot_dimension_numbers<[1], [0], [0], [1], [0, 0, 1, 1], [], []>} : vector<8x128xf32>, vector<128x128xf32>, vector<8x128xf32> -> vector<8x128xf32>
    %31 = arith.addf %30, %29 : vector<8x128xf32>
    %32 = vector.broadcast %5 : vector<1x128xf32> to vector<8x128xf32>
    %33 = arith.addf %31, %32 : vector<8x128xf32>
    %34 = math.tanh %33 : vector<8x128xf32>
    %c2_23 = arith.constant 2 : index
    %c0_24 = arith.constant 0 : index
    %c0_25 = arith.constant 0 : index
    %35 = vector.load %arg11[%c2_23, %c0_24, %c0_25] : memref<8x8x128xf32, #tpu.memory_space<vmem>>, vector<1x8x128xf32>
    %36 = vector.shape_cast %35 : vector<1x8x128xf32> to vector<8x128xf32>
    %37 = vector.shape_cast %34 : vector<8x128xf32> to vector<1x8x128xf32>
    tpu.vector_store %arg11[%c2_23, %c0_24, %c0_25], %37 {strides = array<i32>} : memref<8x8x128xf32, #tpu.memory_space<vmem>>, vector<1x8x128xf32>,
    %c3 = arith.constant 3 : index
    %c0_26 = arith.constant 0 : index
    %c0_27 = arith.constant 0 : index
    %38 = vector.load %arg2[%c3, %c0_26, %c0_27] : memref<8x8x128xf32, #tpu.memory_space<vmem>>, vector<1x8x128xf32>
    %39 = vector.shape_cast %38 : vector<1x8x128xf32> to vector<8x128xf32>
    %cst_28 = arith.constant dense<0.000000e+00> : vector<8x128xf32>
    %40 = tpu.matmul %34, %3, %cst_28 {dimension_numbers = #tpu.dot_dimension_numbers<[1], [0], [0], [1], [0, 0, 1, 1], [], []>} : vector<8x128xf32>, vector<128x128xf32>, vector<8x128xf32> -> vector<8x128xf32>
    %41 = arith.addf %40, %39 : vector<8x128xf32>
    %42 = vector.broadcast %5 : vector<1x128xf32> to vector<8x128xf32>
    %43 = arith.addf %41, %42 : vector<8x128xf32>
    %44 = math.tanh %43 : vector<8x128xf32>
    %c3_29 = arith.constant 3 : index
    %c0_30 = arith.constant 0 : index
    %c0_31 = arith.constant 0 : index
    %45 = vector.load %arg11[%c3_29, %c0_30, %c0_31] : memref<8x8x128xf32, #tpu.memory_space<vmem>>, vector<1x8x128xf32>
    %46 = vector.shape_cast %45 : vector<1x8x128xf32> to vector<8x128xf32>
    %47 = vector.shape_cast %44 : vector<8x128xf32> to vector<1x8x128xf32>
    tpu.vector_store %arg11[%c3_29, %c0_30, %c0_31], %47 {strides = array<i32>} : memref<8x8x128xf32, #tpu.memory_space<vmem>>, vector<1x8x128xf32>,
    %c4 = arith.constant 4 : index
    %c0_32 = arith.constant 0 : index
    %c0_33 = arith.constant 0 : index
    %48 = vector.load %arg2[%c4, %c0_32, %c0_33] : memref<8x8x128xf32, #tpu.memory_space<vmem>>, vector<1x8x128xf32>
    %49 = vector.shape_cast %48 : vector<1x8x128xf32> to vector<8x128xf32>
    %cst_34 = arith.constant dense<0.000000e+00> : vector<8x128xf32>
    %50 = tpu.matmul %44, %3, %cst_34 {dimension_numbers = #tpu.dot_dimension_numbers<[1], [0], [0], [1], [0, 0, 1, 1], [], []>} : vector<8x128xf32>, vector<128x128xf32>, vector<8x128xf32> -> vector<8x128xf32>
    %51 = arith.addf %50, %49 : vector<8x128xf32>
    %52 = vector.broadcast %5 : vector<1x128xf32> to vector<8x128xf32>
    %53 = arith.addf %51, %52 : vector<8x128xf32>
    %54 = math.tanh %53 : vector<8x128xf32>
    %c4_35 = arith.constant 4 : index
    %c0_36 = arith.constant 0 : index
    %c0_37 = arith.constant 0 : index
    %55 = vector.load %arg11[%c4_35, %c0_36, %c0_37] : memref<8x8x128xf32, #tpu.memory_space<vmem>>, vector<1x8x128xf32>
    %56 = vector.shape_cast %55 : vector<1x8x128xf32> to vector<8x128xf32>
    %57 = vector.shape_cast %54 : vector<8x128xf32> to vector<1x8x128xf32>
    tpu.vector_store %arg11[%c4_35, %c0_36, %c0_37], %57 {strides = array<i32>} : memref<8x8x128xf32, #tpu.memory_space<vmem>>, vector<1x8x128xf32>,
    %c5 = arith.constant 5 : index
    %c0_38 = arith.constant 0 : index
    %c0_39 = arith.constant 0 : index
    %58 = vector.load %arg2[%c5, %c0_38, %c0_39] : memref<8x8x128xf32, #tpu.memory_space<vmem>>, vector<1x8x128xf32>
    %59 = vector.shape_cast %58 : vector<1x8x128xf32> to vector<8x128xf32>
    %cst_40 = arith.constant dense<0.000000e+00> : vector<8x128xf32>
    %60 = tpu.matmul %54, %3, %cst_40 {dimension_numbers = #tpu.dot_dimension_numbers<[1], [0], [0], [1], [0, 0, 1, 1], [], []>} : vector<8x128xf32>, vector<128x128xf32>, vector<8x128xf32> -> vector<8x128xf32>
    %61 = arith.addf %60, %59 : vector<8x128xf32>
    %62 = vector.broadcast %5 : vector<1x128xf32> to vector<8x128xf32>
    %63 = arith.addf %61, %62 : vector<8x128xf32>
    %64 = math.tanh %63 : vector<8x128xf32>
    %c5_41 = arith.constant 5 : index
    %c0_42 = arith.constant 0 : index
    %c0_43 = arith.constant 0 : index
    %65 = vector.load %arg11[%c5_41, %c0_42, %c0_43] : memref<8x8x128xf32, #tpu.memory_space<vmem>>, vector<1x8x128xf32>
    %66 = vector.shape_cast %65 : vector<1x8x128xf32> to vector<8x128xf32>
    %67 = vector.shape_cast %64 : vector<8x128xf32> to vector<1x8x128xf32>
    tpu.vector_store %arg11[%c5_41, %c0_42, %c0_43], %67 {strides = array<i32>} : memref<8x8x128xf32, #tpu.memory_space<vmem>>, vector<1x8x128xf32>,
    %c6 = arith.constant 6 : index
    %c0_44 = arith.constant 0 : index
    %c0_45 = arith.constant 0 : index
    %68 = vector.load %arg2[%c6, %c0_44, %c0_45] : memref<8x8x128xf32, #tpu.memory_space<vmem>>, vector<1x8x128xf32>
    %69 = vector.shape_cast %68 : vector<1x8x128xf32> to vector<8x128xf32>
    %cst_46 = arith.constant dense<0.000000e+00> : vector<8x128xf32>
    %70 = tpu.matmul %64, %3, %cst_46 {dimension_numbers = #tpu.dot_dimension_numbers<[1], [0], [0], [1], [0, 0, 1, 1], [], []>} : vector<8x128xf32>, vector<128x128xf32>, vector<8x128xf32> -> vector<8x128xf32>
    %71 = arith.addf %70, %69 : vector<8x128xf32>
    %72 = vector.broadcast %5 : vector<1x128xf32> to vector<8x128xf32>
    %73 = arith.addf %71, %72 : vector<8x128xf32>
    %74 = math.tanh %73 : vector<8x128xf32>
    %c6_47 = arith.constant 6 : index
    %c0_48 = arith.constant 0 : index
    %c0_49 = arith.constant 0 : index
    %75 = vector.load %arg11[%c6_47, %c0_48, %c0_49] : memref<8x8x128xf32, #tpu.memory_space<vmem>>, vector<1x8x128xf32>
    %76 = vector.shape_cast %75 : vector<1x8x128xf32> to vector<8x128xf32>
    %77 = vector.shape_cast %74 : vector<8x128xf32> to vector<1x8x128xf32>
    tpu.vector_store %arg11[%c6_47, %c0_48, %c0_49], %77 {strides = array<i32>} : memref<8x8x128xf32, #tpu.memory_space<vmem>>, vector<1x8x128xf32>,
    %c7 = arith.constant 7 : index
    %c0_50 = arith.constant 0 : index
    %c0_51 = arith.constant 0 : index
    %78 = vector.load %arg2[%c7, %c0_50, %c0_51] : memref<8x8x128xf32, #tpu.memory_space<vmem>>, vector<1x8x128xf32>
    %79 = vector.shape_cast %78 : vector<1x8x128xf32> to vector<8x128xf32>
    %cst_52 = arith.constant dense<0.000000e+00> : vector<8x128xf32>
    %80 = tpu.matmul %74, %3, %cst_52 {dimension_numbers = #tpu.dot_dimension_numbers<[1], [0], [0], [1], [0, 0, 1, 1], [], []>} : vector<8x128xf32>, vector<128x128xf32>, vector<8x128xf32> -> vector<8x128xf32>
    %81 = arith.addf %80, %79 : vector<8x128xf32>
    %82 = vector.broadcast %5 : vector<1x128xf32> to vector<8x128xf32>
    %83 = arith.addf %81, %82 : vector<8x128xf32>
    %84 = math.tanh %83 : vector<8x128xf32>
    %c7_53 = arith.constant 7 : index
    %c0_54 = arith.constant 0 : index
    %c0_55 = arith.constant 0 : index
    %85 = vector.load %arg11[%c7_53, %c0_54, %c0_55] : memref<8x8x128xf32, #tpu.memory_space<vmem>>, vector<1x8x128xf32>
    %86 = vector.shape_cast %85 : vector<1x8x128xf32> to vector<8x128xf32>
    %87 = vector.shape_cast %84 : vector<8x128xf32> to vector<1x8x128xf32>
    tpu.vector_store %arg11[%c7_53, %c0_54, %c0_55], %87 {strides = array<i32>} : memref<8x8x128xf32, #tpu.memory_space<vmem>>, vector<1x8x128xf32>,
    %c0_56 = arith.constant 0 : index
    %c0_57 = arith.constant 0 : index
    %c0_58 = arith.constant 0 : index
    %88 = vector.load %arg10[%c0_56, %c0_57, %c0_58] : memref<2x8x128xf32, #tpu.memory_space<vmem>>, vector<1x8x128xf32>
    %89 = vector.shape_cast %88 : vector<1x8x128xf32> to vector<8x128xf32>
    %90 = vector.shape_cast %84 : vector<8x128xf32> to vector<1x8x128xf32>
    tpu.vector_store %arg10[%c0_56, %c0_57, %c0_58], %90 {strides = array<i32>} : memref<2x8x128xf32, #tpu.memory_space<vmem>>, vector<1x8x128xf32>,
    %c0_59 = arith.constant 0 : index
    %c0_60 = arith.constant 0 : index
    %c0_61 = arith.constant 0 : index
    %91 = vector.load %arg5[%c0_59, %c0_60, %c0_61] : memref<1x128x128xf32, #tpu.memory_space<vmem>>, vector<1x128x128xf32>
    %92 = vector.shape_cast %91 : vector<1x128x128xf32> to vector<128x128xf32>
    %c1_62 = arith.constant 1 : index
    %c0_63 = arith.constant 0 : index
    %c0_64 = arith.constant 0 : index
    %93 = vector.load %arg6[%c1_62, %c0_63, %c0_64] : memref<2x1x128xf32, #tpu.memory_space<vmem>>, vector<1x1x128xf32>
    %94 = vector.shape_cast %93 : vector<1x1x128xf32> to vector<1x128xf32>
    %c0_65 = arith.constant 0 : index
    %c0_66 = arith.constant 0 : index
    %c0_67 = arith.constant 0 : index
    %95 = vector.load %arg11[%c0_65, %c0_66, %c0_67] : memref<8x8x128xf32, #tpu.memory_space<vmem>>, vector<8x8x128xf32>
    %96 = vector.shape_cast %95 : vector<8x8x128xf32> to vector<64x128xf32>
    %c0_68 = arith.constant 0 : index
    %c0_69 = arith.constant 0 : index
    %c0_70 = arith.constant 0 : index
    %97 = vector.load %arg4[%c0_68, %c0_69, %c0_70] : memref<1x128x128xf32, #tpu.memory_space<vmem>>, vector<1x128x128xf32>
    %98 = vector.shape_cast %97 : vector<1x128x128xf32> to vector<128x128xf32>
    %cst_71 = arith.constant dense<0.000000e+00> : vector<64x128xf32>
    %99 = tpu.matmul %96, %98, %cst_71 {dimension_numbers = #tpu.dot_dimension_numbers<[1], [0], [0], [1], [0, 0, 1, 1], [], []>} : vector<64x128xf32>, vector<128x128xf32>, vector<64x128xf32> -> vector<64x128xf32>
    %100 = vector.shape_cast %99 : vector<64x128xf32> to vector<8x8x128xf32>
    %c1_72 = arith.constant 1 : index
    %c0_73 = arith.constant 0 : index
    %c0_74 = arith.constant 0 : index
    %101 = vector.load %arg10[%c1_72, %c0_73, %c0_74] : memref<2x8x128xf32, #tpu.memory_space<vmem>>, vector<1x8x128xf32>
    %102 = vector.shape_cast %101 : vector<1x8x128xf32> to vector<8x128xf32>
    %103 = vector.extract_strided_slice %100 {offsets = [0, 0, 0], sizes = [1, 8, 128], strides = [1, 1, 1]} : vector<8x8x128xf32> to vector<1x8x128xf32>
    %104 = vector.shape_cast %103 : vector<1x8x128xf32> to vector<8x128xf32>
    %cst_75 = arith.constant dense<0.000000e+00> : vector<8x128xf32>
    %105 = tpu.matmul %102, %92, %cst_75 {dimension_numbers = #tpu.dot_dimension_numbers<[1], [0], [0], [1], [0, 0, 1, 1], [], []>} : vector<8x128xf32>, vector<128x128xf32>, vector<8x128xf32> -> vector<8x128xf32>
    %106 = arith.addf %105, %104 : vector<8x128xf32>
    %107 = vector.broadcast %94 : vector<1x128xf32> to vector<8x128xf32>
    %108 = arith.addf %106, %107 : vector<8x128xf32>
    %109 = math.tanh %108 : vector<8x128xf32>
    %110 = vector.extract_strided_slice %100 {offsets = [1, 0, 0], sizes = [1, 8, 128], strides = [1, 1, 1]} : vector<8x8x128xf32> to vector<1x8x128xf32>
    %111 = vector.shape_cast %110 : vector<1x8x128xf32> to vector<8x128xf32>
    %cst_76 = arith.constant dense<0.000000e+00> : vector<8x128xf32>
    %112 = tpu.matmul %109, %92, %cst_76 {dimension_numbers = #tpu.dot_dimension_numbers<[1], [0], [0], [1], [0, 0, 1, 1], [], []>} : vector<8x128xf32>, vector<128x128xf32>, vector<8x128xf32> -> vector<8x128xf32>
    %113 = arith.addf %112, %111 : vector<8x128xf32>
    %114 = vector.broadcast %94 : vector<1x128xf32> to vector<8x128xf32>
    %115 = arith.addf %113, %114 : vector<8x128xf32>
    %116 = math.tanh %115 : vector<8x128xf32>
    %117 = vector.extract_strided_slice %100 {offsets = [2, 0, 0], sizes = [1, 8, 128], strides = [1, 1, 1]} : vector<8x8x128xf32> to vector<1x8x128xf32>
    %118 = vector.shape_cast %117 : vector<1x8x128xf32> to vector<8x128xf32>
    %cst_77 = arith.constant dense<0.000000e+00> : vector<8x128xf32>
    %119 = tpu.matmul %116, %92, %cst_77 {dimension_numbers = #tpu.dot_dimension_numbers<[1], [0], [0], [1], [0, 0, 1, 1], [], []>} : vector<8x128xf32>, vector<128x128xf32>, vector<8x128xf32> -> vector<8x128xf32>
    %120 = arith.addf %119, %118 : vector<8x128xf32>
    %121 = vector.broadcast %94 : vector<1x128xf32> to vector<8x128xf32>
    %122 = arith.addf %120, %121 : vector<8x128xf32>
    %123 = math.tanh %122 : vector<8x128xf32>
    %124 = vector.extract_strided_slice %100 {offsets = [3, 0, 0], sizes = [1, 8, 128], strides = [1, 1, 1]} : vector<8x8x128xf32> to vector<1x8x128xf32>
    %125 = vector.shape_cast %124 : vector<1x8x128xf32> to vector<8x128xf32>
    %cst_78 = arith.constant dense<0.000000e+00> : vector<8x128xf32>
    %126 = tpu.matmul %123, %92, %cst_78 {dimension_numbers = #tpu.dot_dimension_numbers<[1], [0], [0], [1], [0, 0, 1, 1], [], []>} : vector<8x128xf32>, vector<128x128xf32>, vector<8x128xf32> -> vector<8x128xf32>
    %127 = arith.addf %126, %125 : vector<8x128xf32>
    %128 = vector.broadcast %94 : vector<1x128xf32> to vector<8x128xf32>
    %129 = arith.addf %127, %128 : vector<8x128xf32>
    %130 = math.tanh %129 : vector<8x128xf32>
    %131 = vector.extract_strided_slice %100 {offsets = [4, 0, 0], sizes = [1, 8, 128], strides = [1, 1, 1]} : vector<8x8x128xf32> to vector<1x8x128xf32>
    %132 = vector.shape_cast %131 : vector<1x8x128xf32> to vector<8x128xf32>
    %cst_79 = arith.constant dense<0.000000e+00> : vector<8x128xf32>
    %133 = tpu.matmul %130, %92, %cst_79 {dimension_numbers = #tpu.dot_dimension_numbers<[1], [0], [0], [1], [0, 0, 1, 1], [], []>} : vector<8x128xf32>, vector<128x128xf32>, vector<8x128xf32> -> vector<8x128xf32>
    %134 = arith.addf %133, %132 : vector<8x128xf32>
    %135 = vector.broadcast %94 : vector<1x128xf32> to vector<8x128xf32>
    %136 = arith.addf %134, %135 : vector<8x128xf32>
    %137 = math.tanh %136 : vector<8x128xf32>
    %138 = vector.extract_strided_slice %100 {offsets = [5, 0, 0], sizes = [1, 8, 128], strides = [1, 1, 1]} : vector<8x8x128xf32> to vector<1x8x128xf32>
    %139 = vector.shape_cast %138 : vector<1x8x128xf32> to vector<8x128xf32>
    %cst_80 = arith.constant dense<0.000000e+00> : vector<8x128xf32>
    %140 = tpu.matmul %137, %92, %cst_80 {dimension_numbers = #tpu.dot_dimension_numbers<[1], [0], [0], [1], [0, 0, 1, 1], [], []>} : vector<8x128xf32>, vector<128x128xf32>, vector<8x128xf32> -> vector<8x128xf32>
    %141 = arith.addf %140, %139 : vector<8x128xf32>
    %142 = vector.broadcast %94 : vector<1x128xf32> to vector<8x128xf32>
    %143 = arith.addf %141, %142 : vector<8x128xf32>
    %144 = math.tanh %143 : vector<8x128xf32>
    %145 = vector.extract_strided_slice %100 {offsets = [6, 0, 0], sizes = [1, 8, 128], strides = [1, 1, 1]} : vector<8x8x128xf32> to vector<1x8x128xf32>
    %146 = vector.shape_cast %145 : vector<1x8x128xf32> to vector<8x128xf32>
    %cst_81 = arith.constant dense<0.000000e+00> : vector<8x128xf32>
    %147 = tpu.matmul %144, %92, %cst_81 {dimension_numbers = #tpu.dot_dimension_numbers<[1], [0], [0], [1], [0, 0, 1, 1], [], []>} : vector<8x128xf32>, vector<128x128xf32>, vector<8x128xf32> -> vector<8x128xf32>
    %148 = arith.addf %147, %146 : vector<8x128xf32>
    %149 = vector.broadcast %94 : vector<1x128xf32> to vector<8x128xf32>
    %150 = arith.addf %148, %149 : vector<8x128xf32>
    %151 = math.tanh %150 : vector<8x128xf32>
    %152 = vector.extract_strided_slice %100 {offsets = [7, 0, 0], sizes = [1, 8, 128], strides = [1, 1, 1]} : vector<8x8x128xf32> to vector<1x8x128xf32>
    %153 = vector.shape_cast %152 : vector<1x8x128xf32> to vector<8x128xf32>
    %cst_82 = arith.constant dense<0.000000e+00> : vector<8x128xf32>
    %154 = tpu.matmul %151, %92, %cst_82 {dimension_numbers = #tpu.dot_dimension_numbers<[1], [0], [0], [1], [0, 0, 1, 1], [], []>} : vector<8x128xf32>, vector<128x128xf32>, vector<8x128xf32> -> vector<8x128xf32>
    %155 = arith.addf %154, %153 : vector<8x128xf32>
    %156 = vector.broadcast %94 : vector<1x128xf32> to vector<8x128xf32>
    %157 = arith.addf %155, %156 : vector<8x128xf32>
    %158 = math.tanh %157 : vector<8x128xf32>
    %c1_83 = arith.constant 1 : index
    %c0_84 = arith.constant 0 : index
    %c0_85 = arith.constant 0 : index
    %159 = vector.load %arg10[%c1_83, %c0_84, %c0_85] : memref<2x8x128xf32, #tpu.memory_space<vmem>>, vector<1x8x128xf32>
    %160 = vector.shape_cast %159 : vector<1x8x128xf32> to vector<8x128xf32>
    %161 = vector.shape_cast %158 : vector<8x128xf32> to vector<1x8x128xf32>
    tpu.vector_store %arg10[%c1_83, %c0_84, %c0_85], %161 {strides = array<i32>} : memref<2x8x128xf32, #tpu.memory_space<vmem>>, vector<1x8x128xf32>,
    %c0_i32_86 = arith.constant 0 : i32
    %162 = arith.cmpi eq, %arg1, %c0_i32_86 : i32
    %163 = arith.extui %162 : i1 to i32
    %c0_i32_87 = arith.constant 0 : i32
    %164 = arith.cmpi ne, %163, %c0_i32_87 : i32
    scf.if %164 {
      %c1_88 = arith.constant 1 : index
      %c0_89 = arith.constant 0 : index
      %c0_90 = arith.constant 0 : index
      %165 = vector.load %arg10[%c1_88, %c0_89, %c0_90] : memref<2x8x128xf32, #tpu.memory_space<vmem>>, vector<1x8x128xf32>
      %166 = vector.shape_cast %165 : vector<1x8x128xf32> to vector<8x128xf32>
      %c0_91 = arith.constant 0 : index
      %c0_92 = arith.constant 0 : index
      %167 = vector.load %arg7[%c0_91, %c0_92] : memref<128x128xf32, #tpu.memory_space<vmem>>, vector<128x128xf32>
      %cst_93 = arith.constant dense<0.000000e+00> : vector<8x128xf32>
      %168 = tpu.matmul %166, %167, %cst_93 {dimension_numbers = #tpu.dot_dimension_numbers<[1], [0], [0], [1], [0, 0, 1, 1], [], []>} : vector<8x128xf32>, vector<128x128xf32>, vector<8x128xf32> -> vector<8x128xf32>
      %c0_94 = arith.constant 0 : index
      %c0_95 = arith.constant 0 : index
      %169 = vector.load %arg8[%c0_94, %c0_95] : memref<1x128xf32, #tpu.memory_space<vmem>>, vector<1x128xf32>
      %170 = vector.broadcast %169 : vector<1x128xf32> to vector<8x128xf32>
      %171 = arith.addf %168, %170 : vector<8x128xf32>
      %c0_96 = arith.constant 0 : index
      %c0_97 = arith.constant 0 : index
      %172 = vector.load %arg9[%c0_96, %c0_97] : memref<8x128xf32, #tpu.memory_space<vmem>>, vector<8x128xf32>
      tpu.vector_store %arg9[%c0_96, %c0_97], %171 {strides = array<i32>} : memref<8x128xf32, #tpu.memory_space<vmem>>, vector<8x128xf32>,
    } else {
    }
    return
  }
  func.func @transform_0(%arg0: i32, %arg1: i32) -> (i32, i32, i32) {
    %c0_i32 = arith.constant 0 : i32
    %c0_i32_0 = arith.constant 0 : i32
    return %arg1, %arg0, %c0_i32 : i32, i32, i32
  }
  func.func @transform_1(%arg0: i32, %arg1: i32) -> (i32, i32) {
    %c0_i32 = arith.constant 0 : i32
    %c0_i32_0 = arith.constant 0 : i32
    %c0_i32_1 = arith.constant 0 : i32
    return %c0_i32, %c0_i32_0 : i32, i32
  }
  func.func @transform_2(%arg0: i32, %arg1: i32) -> (i32, i32, i32) {
    %c0_i32 = arith.constant 0 : i32
    %c0_i32_0 = arith.constant 0 : i32
    %c0_i32_1 = arith.constant 0 : i32
    %c0_i32_2 = arith.constant 0 : i32
    return %c0_i32, %c0_i32_0, %c0_i32_1 : i32, i32, i32
  }
  func.func @transform_3(%arg0: i32, %arg1: i32) -> (i32, i32, i32) {
    %c0_i32 = arith.constant 0 : i32
    %c0_i32_0 = arith.constant 0 : i32
    %c0_i32_1 = arith.constant 0 : i32
    %c0_i32_2 = arith.constant 0 : i32
    return %c0_i32, %c0_i32_0, %c0_i32_1 : i32, i32, i32
  }
  func.func @transform_4(%arg0: i32, %arg1: i32) -> (i32, i32, i32) {
    %c0_i32 = arith.constant 0 : i32
    %c0_i32_0 = arith.constant 0 : i32
    %c0_i32_1 = arith.constant 0 : i32
    %c0_i32_2 = arith.constant 0 : i32
    return %c0_i32, %c0_i32_0, %c0_i32_1 : i32, i32, i32
  }
  func.func @transform_5(%arg0: i32, %arg1: i32) -> (i32, i32) {
    %c0_i32 = arith.constant 0 : i32
    %c0_i32_0 = arith.constant 0 : i32
    %c0_i32_1 = arith.constant 0 : i32
    return %c0_i32, %c0_i32_0 : i32, i32
  }
  func.func @transform_6(%arg0: i32, %arg1: i32) -> (i32, i32) {
    %c0_i32 = arith.constant 0 : i32
    %c0_i32_0 = arith.constant 0 : i32
    %c0_i32_1 = arith.constant 0 : i32
    return %c0_i32, %c0_i32_0 : i32, i32
  }
  func.func @transform_7(%arg0: i32, %arg1: i32) -> (i32, i32) {
    %c0_i32 = arith.constant 0 : i32
    %c0_i32_0 = arith.constant 0 : i32
    return %arg0, %c0_i32 : i32, i32
  }
}

</mosaic_0001>

<bundles_post_ra>
// kernel: tpu_custom_call.1
= control target key start
LH: loop header
LB: loop body
LE: loop exit
PB: predicated region body
PF: predicated region fallthrough
CT: control target
= control target key end

     0   :  { %12 = vsyncpa [#allocation5], 0  ;;  %s3712_s0 = inlined_call_operand.hbm [shape: f32[8,8,128], index: 0, kind: input, shape index: {}]   ;;  %s3713_s1 = inlined_call_operand.hbm [shape: f32[128,128], index: 1, kind: input, shape index: {}]   ;;  %s3714_s2 = inlined_call_operand.hbm [shape: f32[1,128,128], index: 2, kind: input, shape index: {}]   ;;  %s3715_s3 = inlined_call_operand.hbm [shape: f32[1,128,128], index: 3, kind: input, shape index: {}]   ;;  %s3716_s4 = inlined_call_operand.vmem [shape: f32[2,1,128], index: 4, kind: input, shape index: {}]   ;;  %s3717_s5 = inlined_call_operand.hbm [shape: f32[128,128], index: 5, kind: input, shape index: {}]   ;;  %s3718_s6 = inlined_call_operand.vmem [shape: f32[1,128], index: 6, kind: input, shape index: {}]   ;;  %s3719_s7 = inlined_call_operand.hbm [shape: f32[8,128], index: 7, kind: output, shape index: {}]  }
   0x1   :  { %13 = vsyncpa [#allocation8], 0 }
   0x2   :  { %14 = vsyncpa [#allocation11], 0 }
   0x3   :  { %15 = vsyncpa [#allocation6], 0  ;;  %s3158_s24 = smov [#allocation7]   ;;  %s3159_s26 = smov [#allocation10]  }
   0x4   :  { %s33_s25 = sshll.u32 %s3158_s24, 4  ;;  %s57_s27 = sshll.u32 %s3159_s26, 4  ;;  %s34_s25 = int_to_ptr.vmem [resolvable:$true] %s33_s25  ;;  %s3209_s27 = int_to_ptr.vmem [resolvable:$true] %s57_s27 }
   0x5   :  { %s3018_s30 = scalar_lea.hbm %s3713_s1, 2048 }
   0x6   :  { %p3019_p0 = scmp.ne.s32.totalorder %s3713_s1, %s3018_s30  ;;  %p3022_p1 = scmp.lt.u32.totalorder %s3018_s30, %s3713_s1 }
   0x8   :  { %p3024_p2 = pnand %p3022_p1, %p3019_p0 }
   0xa   :  { %3027 = shalt.err (!%p3024_p2)
}
   0xb   :  { %s3028_s12 = scalar_lea.vmem %s34_s25, 2048  ;;  %p3033_p4 = scmp.lt.s32.totalorder %s34_s25, %s34_s25 }
   0xc   :  { %p3029_p3 = scmp.ne.s32.totalorder %s34_s25, %s3028_s12  ;;  %p3034_p5 = scmp.lt.s32.totalorder %s3028_s12, %s3028_s12 }
   0xe   :  { %p3035_p6 = por %p3034_p5, %p3033_p4 }
  0x10   :  { %p3036_p7 = pnand %p3035_p6, %p3029_p3 }
  0x12   :  { %3039 = shalt.err (!%p3036_p7)
}
  0x13   :  { %s3160_s13 = smov 128   ;;  %s3161_s14 = smov 8  }
  0x14   :  { %39 = dma.hbm_to_vmem [thread:$0]  %s3713_s1, 2048, %s34_s25, [#allocation8], %s3160_s13, %s3160_s13, %s3161_s14  }
  0x15   :  { %s3040_s19 = scalar_lea.hbm %s3715_s3, 2048 }
  0x16   :  { %p3041_p8 = scmp.ne.s32.totalorder %s3715_s3, %s3040_s19  ;;  %p3044_p9 = scmp.lt.u32.totalorder %s3040_s19, %s3715_s3 }
  0x18   :  { %p3046_p10 = pnand %p3044_p9, %p3041_p8 }
  0x1a   :  { %3049 = shalt.err (!%p3046_p10)
}
  0x1b   :  { %s3050_s24 = scalar_lea.vmem %s3209_s27, 2048  ;;  %p3055_p12 = scmp.lt.s32.totalorder %s3209_s27, %s3209_s27 }
  0x1c   :  { %p3051_p11 = scmp.ne.s32.totalorder %s3209_s27, %s3050_s24  ;;  %p3056_p13 = scmp.lt.s32.totalorder %s3050_s24, %s3050_s24 }
  0x1e   :  { %p3057_p0 = por %p3056_p13, %p3055_p12 }
  0x20   :  { %p3058_p1 = pnand %p3057_p0, %p3051_p11 }
  0x22   :  { %3061 = shalt.err (!%p3058_p1)
}
  0x23   :  { %63 = dma.hbm_to_vmem [thread:$0]  %s3715_s3, 2048, %s3209_s27, [#allocation11], %s3160_s13, %s3160_s13, %s3161_s14  }
  0x24   :  { %s3162_s26 = smov [#allocation4]   ;;  %s3163_s29 = smov [#allocation9]  }
  0x25   :  { %s21_s28 = sshll.u32 %s3162_s26, 4  ;;  %s45_s30 = sshll.u32 %s3163_s29, 4  ;;  %s22_s28 = int_to_ptr.vmem [resolvable:$true] %s21_s28  ;;  %s3246_s30 = int_to_ptr.vmem [resolvable:$true] %s45_s30 }
  0x26   :  { %s3062_s10 = scalar_lea.hbm %s3712_s0, 1024 }
  0x27   :  { %p3063_p2 = scmp.ne.s32.totalorder %s3712_s0, %s3062_s10  ;;  %p3066_p3 = scmp.lt.u32.totalorder %s3062_s10, %s3712_s0 }
  0x29   :  { %p3068_p4 = pnand %p3066_p3, %p3063_p2 }
  0x2b   :  { %3071 = shalt.err (!%p3068_p4)
}
  0x2c   :  { %s3072_s3 = scalar_lea.vmem %s22_s28, 1024  ;;  %p3077_p6 = scmp.lt.s32.totalorder %s22_s28, %s22_s28 }
  0x2d   :  { %p3073_p5 = scmp.ne.s32.totalorder %s22_s28, %s3072_s3  ;;  %p3078_p7 = scmp.lt.s32.totalorder %s3072_s3, %s3072_s3 }
  0x2f   :  { %p3079_p8 = por %p3078_p7, %p3077_p6 }
  0x31   :  { %p3080_p9 = pnand %p3079_p8, %p3073_p5 }
  0x33   :  { %3083 = shalt.err (!%p3080_p9)
}
  0x34   :  { %27 = dma.hbm_to_vmem [thread:$0]  %s3712_s0, 1024, %s22_s28, [#allocation5], %s3160_s13, %s3160_s13, %s3161_s14  }
  0x35   :  { %s3084_s20 = scalar_lea.hbm %s3714_s2, 2048 }
  0x36   :  { %p3085_p10 = scmp.ne.s32.totalorder %s3714_s2, %s3084_s20  ;;  %p3088_p11 = scmp.lt.u32.totalorder %s3084_s20, %s3714_s2 }
  0x38   :  { %p3090_p12 = pnand %p3088_p11, %p3085_p10 }
  0x3a   :  { %3093 = shalt.err (!%p3090_p12)
}
  0x3b   :  { %s3094_s1 = scalar_lea.vmem %s3246_s30, 2048  ;;  %p3099_p0 = scmp.lt.s32.totalorder %s3246_s30, %s3246_s30 }
  0x3c   :  { %p3095_p13 = scmp.ne.s32.totalorder %s3246_s30, %s3094_s1  ;;  %p3100_p1 = scmp.lt.s32.totalorder %s3094_s1, %s3094_s1 }
  0x3e   :  { %p3101_p2 = por %p3100_p1, %p3099_p0 }
  0x40   :  { %p3102_p3 = pnand %p3101_p2, %p3095_p13 }
  0x42   :  { %3105 = shalt.err (!%p3102_p3)
}
  0x43   :  { %51 = dma.hbm_to_vmem [thread:$0]  %s3714_s2, 2048, %s3246_s30, [#allocation8], %s3160_s13, %s3160_s13, %s3161_s14  }
  0x44   :  { %s3164_s26 = smov [#allocation12]   ;;  %s3106_s9 = scalar_lea.hbm %s3717_s5, 2048 }
  0x45   :  { %s71_s28 = sshll.u32 %s3164_s26, 4  ;;  %p3107_p4 = scmp.ne.s32.totalorder %s3717_s5, %s3106_s9  ;;  %s72_s28 = int_to_ptr.vmem [resolvable:$true] %s71_s28 }
  0x46   :  { %p3110_p5 = scmp.lt.u32.totalorder %s3106_s9, %s3717_s5 }
  0x48   :  { %p3112_p6 = pnand %p3110_p5, %p3107_p4 }
  0x4a   :  { %3115 = shalt.err (!%p3112_p6)
}
  0x4b   :  { %s3116_s16 = scalar_lea.vmem %s72_s28, 2048  ;;  %p3121_p8 = scmp.lt.s32.totalorder %s72_s28, %s72_s28 }
  0x4c   :  { %p3117_p7 = scmp.ne.s32.totalorder %s72_s28, %s3116_s16  ;;  %p3122_p9 = scmp.lt.s32.totalorder %s3116_s16, %s3116_s16 }
  0x4e   :  { %p3123_p10 = por %p3122_p9, %p3121_p8 }
  0x50   :  { %p3124_p11 = pnand %p3123_p10, %p3117_p7 }
  0x52   :  { %3127 = shalt.err (!%p3124_p11)
}
  0x53   :  { %77 = dma.hbm_to_vmem [thread:$0]  %s3717_s5, 2048, %s72_s28, [#allocation11], %s3160_s13, %s3160_s13, %s3161_s14  }
  0x54   :  { %3150 = dma.done.wait [#allocation5], 1024  }
  0x55   :  { %3151 = vsyncadd [#allocation5], 4294966272 }
  0x56   :  { %3152 = dma.done.wait [#allocation8], 4096  }
  0x57   :  { %3153 = vsyncadd [#allocation8], 4294963200 }
  0x58   :  { %3154 = dma.done.wait [#allocation11], 4096  }
  0x59   :  { %3155 = vsyncadd [#allocation11], 4294963200  ;;  %v3165_v0 = vmov 0.0|0.0   ;;  %vm3166_vm0 = vmmov 0   ;;  %v3167_v1 = vmov 0.0   ;;  %v101_v2 = vld [vmem:[#allocation7] sm:$0xff] }
  0x5a   :  { %2535 = vmatprep.subr.bf16.mxu0 %v3165_v0  ;;  %1928 = vmatprep.mubr.msk.f32.mxu0 %vm3166_vm0, %v3167_v1  ;;  %v102_v3 = vld [vmem:[#allocation7 + $0x8] sm:$0xff]  ;;  %v103_v4 = vld [vmem:[#allocation7 + $0x10] sm:$0xff]  ;;  %v104_v6 = vld [vmem:[#allocation7 + $0x18] sm:$0xff]  ;;  %s3168_s17 = smov [#allocation13]  }
  0x5b   :  { %2559 = vmatprep.subr.bf16.mxu1 %v3165_v0  ;;  %1963 = vmatprep.mubr.msk.f32.mxu1 %vm3166_vm0, %v3167_v1  ;;  %v3304_v5 = vpack.c.bf16 %v102_v3, %v101_v2  ;;  %v3307_v7 = vpack.c.bf16 %v104_v6, %v103_v4  ;;  %v105_v8 = vld [vmem:[#allocation7 + $0x20] sm:$0xff]  ;;  %v106_v9 = vld [vmem:[#allocation7 + $0x28] sm:$0xff]  ;;  %v107_v11 = vld [vmem:[#allocation7 + $0x30] sm:$0xff]  ;;  %s1568_s18 = sshll.u32 %s3168_s17, 4  ;;  %s1569_s18 = int_to_ptr.vmem [resolvable:$true] %s1568_s18 }
  0x5c   :  { %v3313_v10 = vpack.c.bf16 %v106_v9, %v105_v8  ;;  %v108_v12 = vld [vmem:[#allocation7 + $0x38] sm:$0xff]  ;;  %v109_v14 = vld [vmem:[#allocation7 + $0x40] sm:$0xff]  ;;  %v110_v15 = vld [vmem:[#allocation7 + $0x48] sm:$0xff]  ;;  %s3128_s19 = scalar_lea.vmem %s1569_s18, 128  ;;  %p3133_p13 = scmp.lt.s32.totalorder %s1569_s18, %s1569_s18 }
  0x5d   :  { %2537 = vmatpush3.bf16.msra.mxu0 %v3304_v5  ;;  %2561 = vmatpush3.bf16.msra.mxu1 %v3304_v5  ;;  %v3319_v13 = vpack.c.bf16 %v108_v12, %v107_v11  ;;  %v3325_v16 = vpack.c.bf16 %v110_v15, %v109_v14  ;;  %v111_v17 = vld [vmem:[#allocation7 + $0x50] sm:$0xff]  ;;  %v112_v18 = vld [vmem:[#allocation7 + $0x58] sm:$0xff]  ;;  %v113_v20 = vld [vmem:[#allocation7 + $0x60] sm:$0xff]  ;;  %p3129_p12 = scmp.ne.s32.totalorder %s1569_s18, %s3128_s19  ;;  %p3134_p0 = scmp.lt.s32.totalorder %s3128_s19, %s3128_s19 }
  0x5e   :  { %2538 = vmatprep.subr.bf16.mxu0 %v3165_v0  ;;  %2562 = vmatprep.subr.bf16.mxu1 %v3165_v0  ;;  %v3331_v19 = vpack.c.bf16 %v112_v18, %v111_v17  ;;  %v114_v21 = vld [vmem:[#allocation7 + $0x68] sm:$0xff]  ;;  %v115_v23 = vld [vmem:[#allocation7 + $0x70] sm:$0xff]  ;;  %v116_v24 = vld [vmem:[#allocation7 + $0x78] sm:$0xff] }
  0x5f   :  { %v3337_v22 = vpack.c.bf16 %v114_v21, %v113_v20  ;;  %v3343_v25 = vpack.c.bf16 %v116_v24, %v115_v23  ;;  %v119_v26 = vld [vmem:[#allocation4] sm:$0xff]  ;;  %v200_v33 = vld [vmem:[#allocation4 + $0x8] sm:$0xff]  ;;  %v276_v39 = vld [vmem:[#allocation4 + $0x10] sm:$0xff]  ;;  %p3135_p1 = por %p3134_p0, %p3133_p13 }
  0x60   :  { %v3374_v27 = vld [vmem:[%s3716_s4] ss:$0 sm:$0xff]  ;;  %v352_v45 = vld [vmem:[#allocation4 + $0x18] sm:$0xff]  ;;  %v759_v58 = vld [vmem:[#allocation9 + $0x8] sm:$0xff] }
  0x61   :  { %2540 = vmatpush3.bf16.msra.mxu0 %v3307_v7  ;;  %2564 = vmatpush3.bf16.msra.mxu1 %v3307_v7  ;;  %v428_v51 = vld [vmem:[#allocation4 + $0x20] sm:$0xff]  ;;  %v504_v60 = vld [vmem:[#allocation4 + $0x28] sm:$0xff]  ;;  %v760_v3 = vld [vmem:[#allocation9 + $0x10] sm:$0xff]  ;;  %p3136_p2 = pnand %p3135_p1, %p3129_p12 }
  0x62   :  { %2541 = vmatprep.subr.bf16.mxu0 %v3165_v0  ;;  %2565 = vmatprep.subr.bf16.mxu1 %v3165_v0  ;;  %v758_v57 = vld [vmem:[#allocation9] sm:$0xff]  ;;  %v761_v4 = vld [vmem:[#allocation9 + $0x18] sm:$0xff]  ;;  %v763_v8 = vld [vmem:[#allocation9 + $0x28] sm:$0xff] }
  0x63   :  { %v2727_v59 = vpack.c.bf16 %v759_v58, %v758_v57  ;;  %v765_v11 = vld [vmem:[#allocation9 + $0x38] sm:$0xff]  ;;  %v767_v14 = vld [vmem:[#allocation9 + $0x48] sm:$0xff] }
  0x64   :  { %v769_v17 = vld [vmem:[#allocation9 + $0x58] sm:$0xff]  ;;  %v771_v20 = vld [vmem:[#allocation9 + $0x68] sm:$0xff] }
  0x65   :  { %2543 = vmatpush3.bf16.msra.mxu0 %v3313_v10  ;;  %2567 = vmatpush3.bf16.msra.mxu1 %v3313_v10  ;;  %v773_v23 = vld [vmem:[#allocation9 + $0x78] sm:$0xff] }
  0x66   :  { %2544 = vmatprep.subr.bf16.mxu0 %v3165_v0  ;;  %2568 = vmatprep.subr.bf16.mxu1 %v3165_v0 }
  0x69   :  { %2546 = vmatpush3.bf16.msra.mxu0 %v3319_v13  ;;  %2570 = vmatpush3.bf16.msra.mxu1 %v3319_v13 }
  0x6a   :  { %2547 = vmatprep.subr.bf16.mxu0 %v3165_v0  ;;  %2571 = vmatprep.subr.bf16.mxu1 %v3165_v0 }
  0x6d   :  { %2549 = vmatpush3.bf16.msra.mxu0 %v3325_v16  ;;  %2573 = vmatpush3.bf16.msra.mxu1 %v3325_v16 }
  0x6e   :  { %2550 = vmatprep.subr.bf16.mxu0 %v3165_v0  ;;  %2574 = vmatprep.subr.bf16.mxu1 %v3165_v0 }
  0x71   :  { %2552 = vmatpush3.bf16.msra.mxu0 %v3331_v19  ;;  %2576 = vmatpush3.bf16.msra.mxu1 %v3331_v19 }
  0x72   :  { %2553 = vmatprep.subr.bf16.mxu0 %v3165_v0  ;;  %2577 = vmatprep.subr.bf16.mxu1 %v3165_v0 }
  0x75   :  { %2555 = vmatpush3.bf16.msra.mxu0 %v3337_v22  ;;  %2579 = vmatpush3.bf16.msra.mxu1 %v3337_v22 }
  0x76   :  { %2556 = vmatprep.subr.bf16.mxu0 %v3165_v0  ;;  %2580 = vmatprep.subr.bf16.mxu1 %v3165_v0 }
  0x79   :  { %2558 = vmatpush3.bf16.msra.mxu0 %v3343_v25  ;;  %2582 = vmatpush3.bf16.msra.mxu1 %v3343_v25 }
  0x7a   :  { %2583 = vmatprep.subr.bf16.mxu0 %v3165_v0  ;;  %2607 = vmatprep.subr.bf16.mxu1 %v3165_v0 }
  0x7c   :  { %1929 = vmatmul.mubr.f32.vlgmr.msra.gmra.mrb[0].mxu0 %v3167_v1 }
  0x7d   :  { %2585 = vmatpush3.bf16.msra.mxu0 %v3304_v5  ;;  %1998 = vmatprep.mubr.msk.f32.mxu0 %vm3166_vm0, %v3167_v1 }
  0x7e   :  { %2586 = vmatprep.subr.bf16.mxu0 %v3165_v0 }
  0x81   :  { %2588 = vmatpush3.bf16.msra.mxu0 %v3307_v7 }
  0x82   :  { %2589 = vmatprep.subr.bf16.mxu0 %v3165_v0 }
  0x85   :  { %2591 = vmatpush3.bf16.msra.mxu0 %v3313_v10 }
  0x86   :  { %2592 = vmatprep.subr.bf16.mxu0 %v3165_v0 }
  0x89   :  { %2594 = vmatpush3.bf16.msra.mxu0 %v3319_v13 }
  0x8a   :  { %2595 = vmatprep.subr.bf16.mxu0 %v3165_v0 }
  0x8d   :  { %2597 = vmatpush3.bf16.msra.mxu0 %v3325_v16 }
  0x8e   :  { %2598 = vmatprep.subr.bf16.mxu0 %v3165_v0 }
  0x91   :  { %2600 = vmatpush3.bf16.msra.mxu0 %v3331_v19 }
  0x92   :  { %2601 = vmatprep.subr.bf16.mxu0 %v3165_v0 }
  0x95   :  { %2603 = vmatpush3.bf16.msra.mxu0 %v3337_v22 }
  0x96   :  { %2604 = vmatprep.subr.bf16.mxu0 %v3165_v0 }
  0x99   :  { %2606 = vmatpush3.bf16.msra.mxu0 %v3343_v25 }
  0x9a   :  { %2631 = vmatprep.subr.bf16.mxu0 %v3165_v0 }
 0x14f   :  { %v186_v28 = vpop.f32.mrb[0].mxu0 }
 0x150   :  { %v187_v29 = vadd.f32 %v186_v28, %v119_v26  ;;  %v1930_v30 = vpop.f32.mrb[1].mxu0  ;;  %v733_v26 = vld [vmem:[#allocation10 + $0x8] sm:$0xff] }
 0x151   :  { %v735_v30 = vld [vmem:[#allocation10 + $0x18] sm:$0xff] }
 0x152   :  { %v196_v31 = vadd.f32 %v3374_v27, %v187_v29  ;;  %v734_v29 = vld [vmem:[#allocation10 + $0x10] sm:$0xff] }
 0x154   :  { %2986 = vtanh.f32 %v196_v31  ;;  %v3496_v31 = vpack.c.bf16 %v735_v30, %v734_v29 }
 0x15e   :  { %v3377_v32 = vpop.eup %2986 }
 0x15f   :  { %1964 = vmatmul.mubr.f32.vlgmr.msra.gmra.mrb[0].mxu1 %v3377_v32 }
 0x160   :  { %2609 = vmatpush3.bf16.msra.mxu1 %v3304_v5  ;;  %2033 = vmatprep.mubr.msk.f32.mxu1 %vm3166_vm0, %v3167_v1 }
 0x161   :  { %2610 = vmatprep.subr.bf16.mxu1 %v3165_v0 }
 0x164   :  { %2612 = vmatpush3.bf16.msra.mxu1 %v3307_v7 }
 0x165   :  { %2613 = vmatprep.subr.bf16.mxu1 %v3165_v0 }
 0x168   :  { %2615 = vmatpush3.bf16.msra.mxu1 %v3313_v10 }
 0x169   :  { %2616 = vmatprep.subr.bf16.mxu1 %v3165_v0 }
 0x16c   :  { %2618 = vmatpush3.bf16.msra.mxu1 %v3319_v13 }
 0x16d   :  { %2619 = vmatprep.subr.bf16.mxu1 %v3165_v0 }
 0x170   :  { %2621 = vmatpush3.bf16.msra.mxu1 %v3325_v16 }
 0x171   :  { %2622 = vmatprep.subr.bf16.mxu1 %v3165_v0 }
 0x174   :  { %2624 = vmatpush3.bf16.msra.mxu1 %v3331_v19 }
 0x175   :  { %2625 = vmatprep.subr.bf16.mxu1 %v3165_v0 }
 0x178   :  { %2627 = vmatpush3.bf16.msra.mxu1 %v3337_v22 }
 0x179   :  { %2628 = vmatprep.subr.bf16.mxu1 %v3165_v0 }
 0x17c   :  { %2630 = vmatpush3.bf16.msra.mxu1 %v3343_v25 }
 0x17d   :  { %2655 = vmatprep.subr.bf16.mxu1 %v3165_v0 }
 0x232   :  { %v267_v34 = vpop.f32.mrb[0].mxu1 }
 0x233   :  { %v268_v35 = vadd.f32 %v267_v34, %v200_v33  ;;  %v1965_v36 = vpop.f32.mrb[1].mxu1  ;;  %v737_v33 = vld [vmem:[#allocation10 + $0x28] sm:$0xff] }
 0x234   :  { %v739_v36 = vld [vmem:[#allocation10 + $0x38] sm:$0xff] }
 0x235   :  { %v271_v37 = vadd.f32 %v3374_v27, %v268_v35  ;;  %v738_v35 = vld [vmem:[#allocation10 + $0x30] sm:$0xff] }
 0x237   :  { %2988 = vtanh.f32 %v271_v37  ;;  %v3504_v37 = vpack.c.bf16 %v739_v36, %v738_v35 }
 0x241   :  { %v3399_v38 = vpop.eup %2988 }
 0x242   :  { %1999 = vmatmul.mubr.f32.vlgmr.msra.gmra.mrb[2].mxu0 %v3399_v38 }
 0x243   :  { %2633 = vmatpush3.bf16.msra.mxu0 %v3304_v5  ;;  %2068 = vmatprep.mubr.msk.f32.mxu0 %vm3166_vm0, %v3167_v1 }
 0x244   :  { %2634 = vmatprep.subr.bf16.mxu0 %v3165_v0 }
 0x247   :  { %2636 = vmatpush3.bf16.msra.mxu0 %v3307_v7 }
 0x248   :  { %2637 = vmatprep.subr.bf16.mxu0 %v3165_v0 }
 0x24b   :  { %2639 = vmatpush3.bf16.msra.mxu0 %v3313_v10 }
 0x24c   :  { %2640 = vmatprep.subr.bf16.mxu0 %v3165_v0 }
 0x24f   :  { %2642 = vmatpush3.bf16.msra.mxu0 %v3319_v13 }
 0x250   :  { %2643 = vmatprep.subr.bf16.mxu0 %v3165_v0 }
 0x253   :  { %2645 = vmatpush3.bf16.msra.mxu0 %v3325_v16 }
 0x254   :  { %2646 = vmatprep.subr.bf16.mxu0 %v3165_v0 }
 0x257   :  { %2648 = vmatpush3.bf16.msra.mxu0 %v3331_v19 }
 0x258   :  { %2649 = vmatprep.subr.bf16.mxu0 %v3165_v0 }
 0x25b   :  { %2651 = vmatpush3.bf16.msra.mxu0 %v3337_v22 }
 0x25c   :  { %2652 = vmatprep.subr.bf16.mxu0 %v3165_v0 }
 0x25f   :  { %2654 = vmatpush3.bf16.msra.mxu0 %v3343_v25 }
 0x260   :  { %2679 = vmatprep.subr.bf16.mxu0 %v3165_v0 }
 0x315   :  { %v343_v40 = vpop.f32.mrb[2].mxu0 }
 0x316   :  { %v344_v41 = vadd.f32 %v343_v40, %v276_v39  ;;  %v2000_v42 = vpop.f32.mrb[3].mxu0  ;;  %v741_v39 = vld [vmem:[#allocation10 + $0x48] sm:$0xff] }
 0x317   :  { %v743_v42 = vld [vmem:[#allocation10 + $0x58] sm:$0xff] }
 0x318   :  { %v347_v43 = vadd.f32 %v3374_v27, %v344_v41  ;;  %v742_v41 = vld [vmem:[#allocation10 + $0x50] sm:$0xff] }
 0x31a   :  { %2990 = vtanh.f32 %v347_v43  ;;  %v3512_v43 = vpack.c.bf16 %v743_v42, %v742_v41  ;;  %v1470_v41 = vld [vmem:[#allocation12 + $0x10] sm:$0xff] }
 0x324   :  { %v3421_v44 = vpop.eup %2990 }
 0x325   :  { %2034 = vmatmul.mubr.f32.vlgmr.msra.gmra.mrb[2].mxu1 %v3421_v44 }
 0x326   :  { %2657 = vmatpush3.bf16.msra.mxu1 %v3304_v5  ;;  %2103 = vmatprep.mubr.msk.f32.mxu1 %vm3166_vm0, %v3167_v1 }
 0x327   :  { %2658 = vmatprep.subr.bf16.mxu1 %v3165_v0 }
 0x32a   :  { %2660 = vmatpush3.bf16.msra.mxu1 %v3307_v7 }
 0x32b   :  { %2661 = vmatprep.subr.bf16.mxu1 %v3165_v0 }
 0x32e   :  { %2663 = vmatpush3.bf16.msra.mxu1 %v3313_v10 }
 0x32f   :  { %2664 = vmatprep.subr.bf16.mxu1 %v3165_v0 }
 0x332   :  { %2666 = vmatpush3.bf16.msra.mxu1 %v3319_v13 }
 0x333   :  { %2667 = vmatprep.subr.bf16.mxu1 %v3165_v0 }
 0x336   :  { %2669 = vmatpush3.bf16.msra.mxu1 %v3325_v16 }
 0x337   :  { %2670 = vmatprep.subr.bf16.mxu1 %v3165_v0 }
 0x33a   :  { %2672 = vmatpush3.bf16.msra.mxu1 %v3331_v19 }
 0x33b   :  { %2673 = vmatprep.subr.bf16.mxu1 %v3165_v0 }
 0x33e   :  { %2675 = vmatpush3.bf16.msra.mxu1 %v3337_v22 }
 0x33f   :  { %2676 = vmatprep.subr.bf16.mxu1 %v3165_v0 }
 0x342   :  { %2678 = vmatpush3.bf16.msra.mxu1 %v3343_v25 }
 0x343   :  { %2703 = vmatprep.subr.bf16.mxu1 %v3165_v0 }
 0x3f8   :  { %v419_v46 = vpop.f32.mrb[2].mxu1 }
 0x3f9   :  { %v420_v47 = vadd.f32 %v419_v46, %v352_v45  ;;  %v2035_v48 = vpop.f32.mrb[3].mxu1  ;;  %v745_v45 = vld [vmem:[#allocation10 + $0x68] sm:$0xff] }
 0x3fa   :  { %v747_v48 = vld [vmem:[#allocation10 + $0x78] sm:$0xff] }
 0x3fb   :  { %v423_v49 = vadd.f32 %v3374_v27, %v420_v47  ;;  %v746_v47 = vld [vmem:[#allocation10 + $0x70] sm:$0xff] }
 0x3fd   :  { %2992 = vtanh.f32 %v423_v49  ;;  %v3520_v49 = vpack.c.bf16 %v747_v48, %v746_v47  ;;  %v1474_v48 = vld [vmem:[#allocation12 + $0x30] sm:$0xff] }
 0x407   :  { %v3443_v50 = vpop.eup %2992 }
 0x408   :  { %2069 = vmatmul.mubr.f32.vlgmr.msra.gmra.mrb[4].mxu0 %v3443_v50 }
 0x409   :  { %2681 = vmatpush3.bf16.msra.mxu0 %v3304_v5  ;;  %2138 = vmatprep.mubr.msk.f32.mxu0 %vm3166_vm0, %v3167_v1 }
 0x40a   :  { %2682 = vmatprep.subr.bf16.mxu0 %v3165_v0 }
 0x40d   :  { %2684 = vmatpush3.bf16.msra.mxu0 %v3307_v7 }
 0x40e   :  { %2685 = vmatprep.subr.bf16.mxu0 %v3165_v0 }
 0x411   :  { %2687 = vmatpush3.bf16.msra.mxu0 %v3313_v10 }
 0x412   :  { %2688 = vmatprep.subr.bf16.mxu0 %v3165_v0 }
 0x415   :  { %2690 = vmatpush3.bf16.msra.mxu0 %v3319_v13 }
 0x416   :  { %2691 = vmatprep.subr.bf16.mxu0 %v3165_v0 }
 0x419   :  { %2693 = vmatpush3.bf16.msra.mxu0 %v3325_v16 }
 0x41a   :  { %2694 = vmatprep.subr.bf16.mxu0 %v3165_v0 }
 0x41d   :  { %2696 = vmatpush3.bf16.msra.mxu0 %v3331_v19 }
 0x41e   :  { %2697 = vmatprep.subr.bf16.mxu0 %v3165_v0 }
 0x421   :  { %2699 = vmatpush3.bf16.msra.mxu0 %v3337_v22 }
 0x422   :  { %2700 = vmatprep.subr.bf16.mxu0 %v3165_v0 }
 0x425   :  { %2702 = vmatpush3.bf16.msra.mxu0 %v3343_v25 }
 0x426   :  { %2728 = vmatprep.subr.bf16.mxu0 %v2727_v59 }
 0x4db   :  { %v495_v52 = vpop.f32.mrb[4].mxu0 }
 0x4dc   :  { %v496_v53 = vadd.f32 %v495_v52, %v428_v51  ;;  %v2070_v54 = vpop.f32.mrb[5].mxu0 }
 0x4de   :  { %v499_v55 = vadd.f32 %v3374_v27, %v496_v53 }
 0x4e0   :  { %2994 = vtanh.f32 %v499_v55 }
 0x4ea   :  { %v3464_v56 = vpop.eup %2994 }
 0x4eb   :  { %2104 = vmatmul.mubr.f32.vlgmr.msra.gmra.mrb[4].mxu1 %v3464_v56 }
 0x4ec   :  { %2705 = vmatpush3.bf16.msra.mxu1 %v3304_v5  ;;  %2173 = vmatprep.mubr.msk.f32.mxu1 %vm3166_vm0, %v3167_v1  ;;  %v2731_v5 = vpack.c.bf16 %v761_v4, %v760_v3 }
 0x4ed   :  { %2706 = vmatprep.subr.bf16.mxu1 %v3165_v0 }
 0x4f0   :  { %2708 = vmatpush3.bf16.msra.mxu1 %v3307_v7  ;;  %v762_v7 = vld [vmem:[#allocation9 + $0x20] sm:$0xff] }
 0x4f1   :  { %2709 = vmatprep.subr.bf16.mxu1 %v3165_v0  ;;  %v2735_v9 = vpack.c.bf16 %v763_v8, %v762_v7 }
 0x4f4   :  { %2711 = vmatpush3.bf16.msra.mxu1 %v3313_v10  ;;  %v764_v10 = vld [vmem:[#allocation9 + $0x30] sm:$0xff] }
 0x4f5   :  { %2712 = vmatprep.subr.bf16.mxu1 %v3165_v0  ;;  %v2739_v12 = vpack.c.bf16 %v765_v11, %v764_v10 }
 0x4f8   :  { %2714 = vmatpush3.bf16.msra.mxu1 %v3319_v13  ;;  %v766_v13 = vld [vmem:[#allocation9 + $0x40] sm:$0xff] }
 0x4f9   :  { %2715 = vmatprep.subr.bf16.mxu1 %v3165_v0  ;;  %v2743_v15 = vpack.c.bf16 %v767_v14, %v766_v13 }
 0x4fc   :  { %2717 = vmatpush3.bf16.msra.mxu1 %v3325_v16  ;;  %v768_v16 = vld [vmem:[#allocation9 + $0x50] sm:$0xff] }
 0x4fd   :  { %2718 = vmatprep.subr.bf16.mxu1 %v3165_v0  ;;  %v2747_v18 = vpack.c.bf16 %v769_v17, %v768_v16 }
 0x500   :  { %2720 = vmatpush3.bf16.msra.mxu1 %v3331_v19  ;;  %v770_v19 = vld [vmem:[#allocation9 + $0x60] sm:$0xff] }
 0x501   :  { %2721 = vmatprep.subr.bf16.mxu1 %v3165_v0  ;;  %v2751_v21 = vpack.c.bf16 %v771_v20, %v770_v19 }
 0x504   :  { %2723 = vmatpush3.bf16.msra.mxu1 %v3337_v22  ;;  %v772_v22 = vld [vmem:[#allocation9 + $0x70] sm:$0xff] }
 0x505   :  { %2724 = vmatprep.subr.bf16.mxu1 %v3165_v0  ;;  %v2755_v24 = vpack.c.bf16 %v773_v23, %v772_v22 }
 0x508   :  { %2726 = vmatpush3.bf16.msra.mxu1 %v3343_v25  ;;  %v732_v25 = vld [vmem:[#allocation10] sm:$0xff] }
 0x509   :  { %2759 = vmatprep.subr.bf16.mxu1 %v3165_v0  ;;  %v3492_v28 = vpack.c.bf16 %v733_v26, %v732_v25 }
 0x5be   :  { %v571_v61 = vpop.f32.mrb[4].mxu1 }
 0x5bf   :  { %v572_v62 = vadd.f32 %v571_v61, %v504_v60  ;;  %v2105_v63 = vpop.f32.mrb[5].mxu1 }
 0x5c1   :  { %v575_v2 = vadd.f32 %v3374_v27, %v572_v62  ;;  %v656_v62 = vld [vmem:[#allocation4 + $0x38] sm:$0xff] }
 0x5c3   :  { %2996 = vtanh.f32 %v575_v2 }
 0x5cd   :  { %v2997_v6 = vpop.eup %2996 }
 0x5ce   :  { %2139 = vmatmul.mubr.f32.vlgmr.msra.gmra.mrb[6].mxu0 %v2997_v6 }
 0x5cf   :  { %2730 = vmatpush3.bf16.msra.mxu0 %v2727_v59  ;;  %2208 = vmatprep.mubr.f32.mxu0 %v3377_v32  ;;  %v736_v32 = vld [vmem:[#allocation10 + $0x20] sm:$0xff] }
 0x5d0   :  { %2732 = vmatprep.subr.bf16.mxu0 %v2731_v5  ;;  %v3500_v34 = vpack.c.bf16 %v737_v33, %v736_v32 }
 0x5d3   :  { %2734 = vmatpush3.bf16.msra.mxu0 %v2731_v5 }
 0x5d4   :  { %2736 = vmatprep.subr.bf16.mxu0 %v2735_v9 }
 0x5d7   :  { %2738 = vmatpush3.bf16.msra.mxu0 %v2735_v9 }
 0x5d8   :  { %2740 = vmatprep.subr.bf16.mxu0 %v2739_v12 }
 0x5db   :  { %2742 = vmatpush3.bf16.msra.mxu0 %v2739_v12 }
 0x5dc   :  { %2744 = vmatprep.subr.bf16.mxu0 %v2743_v15 }
 0x5df   :  { %2746 = vmatpush3.bf16.msra.mxu0 %v2743_v15 }
 0x5e0   :  { %2748 = vmatprep.subr.bf16.mxu0 %v2747_v18 }
 0x5e3   :  { %2750 = vmatpush3.bf16.msra.mxu0 %v2747_v18 }
 0x5e4   :  { %2752 = vmatprep.subr.bf16.mxu0 %v2751_v21 }
 0x5e7   :  { %2754 = vmatpush3.bf16.msra.mxu0 %v2751_v21 }
 0x5e8   :  { %2756 = vmatprep.subr.bf16.mxu0 %v2755_v24 }
 0x5eb   :  { %2758 = vmatpush3.bf16.msra.mxu0 %v2755_v24 }
 0x5ec   :  { %2783 = vmatprep.subr.bf16.mxu0 %v3165_v0 }
 0x5ee   :  { %2209 = vmatmul.mubr.f32.vlgmr.msra.gmra.mrb[8].mxu0 %v3399_v38  ;;  %v740_v38 = vld [vmem:[#allocation10 + $0x40] sm:$0xff] }
 0x5ef   :  { %2211 = vmatprep.mubr.f32.mxu0 %v3421_v44  ;;  %2785 = vmatpush3.bf16.msra.mxu0 %v3492_v28  ;;  %v3508_v40 = vpack.c.bf16 %v741_v39, %v740_v38  ;;  %v744_v44 = vld [vmem:[#allocation10 + $0x60] sm:$0xff] }
 0x5f0   :  { %2786 = vmatprep.subr.bf16.mxu0 %v3165_v0  ;;  %v3516_v46 = vpack.c.bf16 %v745_v45, %v744_v44  ;;  %v1468_v39 = vld [vmem:[#allocation12] sm:$0xff] }
 0x5f1   :  { %v1472_v45 = vld [vmem:[#allocation12 + $0x20] sm:$0xff] }
 0x5f2   :  { %2212 = vmatmul.mubr.f32.gmra.mrb[10].mxu0 %v3443_v50  ;;  %v580_v50 = vld [vmem:[#allocation4 + $0x30] sm:$0xff] }
 0x5f3   :  { %2214 = vmatprep.mubr.f32.mxu0 %v3464_v56  ;;  %2788 = vmatpush3.bf16.msra.mxu0 %v3496_v31 }
 0x5f4   :  { %2789 = vmatprep.subr.bf16.mxu0 %v3165_v0 }
 0x5f6   :  { %2215 = vmatmul.mubr.f32.gmra.mrb[12].mxu0 %v2997_v6  ;;  %v3578_v6 = vld [vmem:[%s3716_s4 + $0x1] ss:$0 sm:$0xff] }
 0x5f7   :  { %2791 = vmatpush3.bf16.msra.mxu0 %v3500_v34 }
 0x5f8   :  { %2792 = vmatprep.subr.bf16.mxu0 %v3165_v0 }
 0x5fb   :  { %2794 = vmatpush3.bf16.msra.mxu0 %v3504_v37 }
 0x5fc   :  { %2795 = vmatprep.subr.bf16.mxu0 %v3165_v0 }
 0x5ff   :  { %2797 = vmatpush3.bf16.msra.mxu0 %v3508_v40 }
 0x600   :  { %2798 = vmatprep.subr.bf16.mxu0 %v3165_v0 }
 0x603   :  { %2800 = vmatpush3.bf16.msra.mxu0 %v3512_v43 }
 0x604   :  { %2801 = vmatprep.subr.bf16.mxu0 %v3165_v0 }
 0x607   :  { %2803 = vmatpush3.bf16.msra.mxu0 %v3516_v46 }
 0x608   :  { %2804 = vmatprep.subr.bf16.mxu0 %v3165_v0 }
 0x60b   :  { %2806 = vmatpush3.bf16.msra.mxu0 %v3520_v49 }
 0x60c   :  { %2831 = vmatprep.subr.bf16.mxu0 %v3165_v0 }
 0x6a1   :  { %v647_v51 = vpop.f32.mrb[6].mxu0 }
 0x6a2   :  { %v648_v52 = vadd.f32 %v647_v51, %v580_v50  ;;  %v2140_v53 = vpop.f32.mrb[7].mxu0 }
 0x6a4   :  { %v651_v54 = vadd.f32 %v3374_v27, %v648_v52 }
 0x6a6   :  { %2998 = vtanh.f32 %v651_v54 }
 0x6b0   :  { %v2999_v55 = vpop.eup %2998 }
 0x6b1   :  { %2174 = vmatmul.mubr.f32.vlgmr.msra.gmra.mrb[6].mxu1 %v2999_v55  ;;  %2217 = vmatprep.mubr.f32.mxu0 %v2999_v55  ;;  %v1476_v55 = vld [vmem:[#allocation12 + $0x40] sm:$0xff] }
 0x6b2   :  { %2761 = vmatpush3.bf16.msra.mxu1 %v3492_v28  ;;  %2252 = vmatprep.mubr.msk.f32.mxu1 %vm3166_vm0, %v3167_v1 }
 0x6b3   :  { %2762 = vmatprep.subr.bf16.mxu1 %v3165_v0 }
 0x6b6   :  { %2764 = vmatpush3.bf16.msra.mxu1 %v3496_v31 }
 0x6b7   :  { %2765 = vmatprep.subr.bf16.mxu1 %v3165_v0 }
 0x6ba   :  { %2767 = vmatpush3.bf16.msra.mxu1 %v3500_v34 }
 0x6bb   :  { %2768 = vmatprep.subr.bf16.mxu1 %v3165_v0 }
 0x6be   :  { %2770 = vmatpush3.bf16.msra.mxu1 %v3504_v37 }
 0x6bf   :  { %2771 = vmatprep.subr.bf16.mxu1 %v3165_v0 }
 0x6c1   :  { %v3535_v56 = vpop.f32.mrb[8].mxu0 }
 0x6c2   :  { %v840_v57 = vpop.f32.mrb[9].mxu0  ;;  %2773 = vmatpush3.bf16.msra.mxu1 %v3508_v40 }
 0x6c3   :  { %2774 = vmatprep.subr.bf16.mxu1 %v3165_v0 }
 0x6c5   :  { %v3539_v58 = vpop.f32.mrb[10].mxu0 }
 0x6c6   :  { %v3541_v59 = vpop.f32.mrb[11].mxu0  ;;  %2776 = vmatpush3.bf16.msra.mxu1 %v3512_v43 }
 0x6c7   :  { %2777 = vmatprep.subr.bf16.mxu1 %v3165_v0 }
 0x6c9   :  { %v3545_v60 = vpop.f32.mrb[12].mxu0 }
 0x6ca   :  { %v3547_v61 = vpop.f32.mrb[13].mxu0  ;;  %2779 = vmatpush3.bf16.msra.mxu1 %v3516_v46 }
 0x6cb   :  { %2780 = vmatprep.subr.bf16.mxu1 %v3165_v0 }
 0x6ce   :  { %2782 = vmatpush3.bf16.msra.mxu1 %v3520_v49 }
 0x6cf   :  { %2807 = vmatprep.subr.bf16.mxu1 %v3165_v0 }
 0x6d1   :  { %2253 = vmatmul.mubr.f32.vlgmr.msra.gmra.mrb[8].mxu1 %v3167_v1 }
 0x6d2   :  { %2809 = vmatpush3.bf16.msra.mxu1 %v3492_v28  ;;  %2322 = vmatprep.mubr.msk.f32.mxu1 %vm3166_vm0, %v3167_v1 }
 0x6d3   :  { %2810 = vmatprep.subr.bf16.mxu1 %v3165_v0 }
 0x6d6   :  { %2812 = vmatpush3.bf16.msra.mxu1 %v3496_v31 }
 0x6d7   :  { %2813 = vmatprep.subr.bf16.mxu1 %v3165_v0 }
 0x6da   :  { %2815 = vmatpush3.bf16.msra.mxu1 %v3500_v34 }
 0x6db   :  { %2816 = vmatprep.subr.bf16.mxu1 %v3165_v0 }
 0x6de   :  { %2818 = vmatpush3.bf16.msra.mxu1 %v3504_v37 }
 0x6df   :  { %2819 = vmatprep.subr.bf16.mxu1 %v3165_v0 }
 0x6e2   :  { %2821 = vmatpush3.bf16.msra.mxu1 %v3508_v40 }
 0x6e3   :  { %2822 = vmatprep.subr.bf16.mxu1 %v3165_v0 }
 0x6e6   :  { %2824 = vmatpush3.bf16.msra.mxu1 %v3512_v43 }
 0x6e7   :  { %2825 = vmatprep.subr.bf16.mxu1 %v3165_v0 }
 0x6ea   :  { %2827 = vmatpush3.bf16.msra.mxu1 %v3516_v46 }
 0x6eb   :  { %2828 = vmatprep.subr.bf16.mxu1 %v3165_v0 }
 0x6ee   :  { %2830 = vmatpush3.bf16.msra.mxu1 %v3520_v49 }
 0x6ef   :  { %2855 = vmatprep.subr.bf16.mxu1 %v3165_v0 }
 0x784   :  { %v723_v63 = vpop.f32.mrb[6].mxu1 }
 0x785   :  { %v724_v2 = vadd.f32 %v723_v63, %v656_v62  ;;  %v2175_v3 = vpop.f32.mrb[7].mxu1  ;;  %v1481_v62 = vld [vmem:[#allocation12 + $0x68] sm:$0xff] }
 0x786   :  { %v1483_v3 = vld [vmem:[#allocation12 + $0x78] sm:$0xff] }
 0x787   :  { %v727_v4 = vadd.f32 %v3374_v27, %v724_v2  ;;  %v1482_v2 = vld [vmem:[#allocation12 + $0x70] sm:$0xff] }
 0x789   :  { %3000 = vtanh.f32 %v727_v4  ;;  %v2973_v4 = vpack.c.bf16 %v1483_v3, %v1482_v2 }
 0x793   :  { %v3001_v5 = vpop.eup %3000 }
 0x794   :  { %2218 = vmatmul.mubr.f32.gmra.mrb[14].mxu0 %v3001_v5 }
 0x795   :  { %2287 = vmatprep.mubr.msk.f32.mxu0 %vm3166_vm0, %v3167_v1 }
 0x7a4   :  { %v947_v7 = vpop.f32.mrb[8].mxu1 }
 0x7a5   :  { %v948_v8 = vadd.f32 %v947_v7, %v840_v57  ;;  %v2254_v9 = vpop.f32.mrb[9].mxu1 }
 0x7a7   :  { %v957_v10 = vadd.f32 %v3578_v6, %v948_v8 }
 0x7a9   :  { %3002 = vtanh.f32 %v957_v10 }
 0x7b3   :  { %v3003_v11 = vpop.eup %3002 }
 0x7b4   :  { %2288 = vmatmul.mubr.f32.vlgmr.msra.gmra.mrb[16].mxu0 %v3003_v11  ;;  %v1582_v11 = vld [vmem:[%s3718_s6] ss:$0 sm:$0xff] }
 0x7b5   :  { %2833 = vmatpush3.bf16.msra.mxu0 %v3492_v28  ;;  %2357 = vmatprep.mubr.msk.f32.mxu0 %vm3166_vm0, %v3167_v1 }
 0x7b6   :  { %2834 = vmatprep.subr.bf16.mxu0 %v3165_v0 }
 0x7b9   :  { %2836 = vmatpush3.bf16.msra.mxu0 %v3496_v31 }
 0x7ba   :  { %2837 = vmatprep.subr.bf16.mxu0 %v3165_v0 }
 0x7bd   :  { %2839 = vmatpush3.bf16.msra.mxu0 %v3500_v34 }
 0x7be   :  { %2840 = vmatprep.subr.bf16.mxu0 %v3165_v0 }
 0x7c1   :  { %2842 = vmatpush3.bf16.msra.mxu0 %v3504_v37 }
 0x7c2   :  { %2843 = vmatprep.subr.bf16.mxu0 %v3165_v0 }
 0x7c5   :  { %2845 = vmatpush3.bf16.msra.mxu0 %v3508_v40 }
 0x7c6   :  { %2846 = vmatprep.subr.bf16.mxu0 %v3165_v0 }
 0x7c9   :  { %2848 = vmatpush3.bf16.msra.mxu0 %v3512_v43 }
 0x7ca   :  { %2849 = vmatprep.subr.bf16.mxu0 %v3165_v0 }
 0x7cd   :  { %2851 = vmatpush3.bf16.msra.mxu0 %v3516_v46 }
 0x7ce   :  { %2852 = vmatprep.subr.bf16.mxu0 %v3165_v0 }
 0x7d1   :  { %2854 = vmatpush3.bf16.msra.mxu0 %v3520_v49 }
 0x7d2   :  { %2879 = vmatprep.subr.bf16.mxu0 %v3165_v0 }
 0x867   :  { %v3599_v27 = vpop.f32.mrb[14].mxu0 }
 0x868   :  { %v3601_v12 = vpop.f32.mrb[15].mxu0 }
 0x887   :  { %v1025_v13 = vpop.f32.mrb[16].mxu0 }
 0x888   :  { %v1026_v14 = vadd.f32 %v3535_v56, %v1025_v13  ;;  %v2289_v15 = vpop.f32.mrb[17].mxu0  ;;  %v1477_v56 = vld [vmem:[#allocation12 + $0x48] sm:$0xff] }
 0x889   :  { %v2964_v57 = vpack.c.bf16 %v1477_v56, %v1476_v55 }
 0x88a   :  { %v1029_v16 = vadd.f32 %v3578_v6, %v1026_v14 }
 0x88c   :  { %3004 = vtanh.f32 %v1029_v16 }
 0x896   :  { %v3005_v17 = vpop.eup %3004 }
 0x897   :  { %2323 = vmatmul.mubr.f32.vlgmr.msra.gmra.mrb[10].mxu1 %v3005_v17 }
 0x898   :  { %2857 = vmatpush3.bf16.msra.mxu1 %v3492_v28  ;;  %2392 = vmatprep.mubr.msk.f32.mxu1 %vm3166_vm0, %v3167_v1 }
 0x899   :  { %2858 = vmatprep.subr.bf16.mxu1 %v3165_v0 }
 0x89c   :  { %2860 = vmatpush3.bf16.msra.mxu1 %v3496_v31 }
 0x89d   :  { %2861 = vmatprep.subr.bf16.mxu1 %v3165_v0 }
 0x8a0   :  { %2863 = vmatpush3.bf16.msra.mxu1 %v3500_v34 }
 0x8a1   :  { %2864 = vmatprep.subr.bf16.mxu1 %v3165_v0 }
 0x8a4   :  { %2866 = vmatpush3.bf16.msra.mxu1 %v3504_v37 }
 0x8a5   :  { %2867 = vmatprep.subr.bf16.mxu1 %v3165_v0 }
 0x8a8   :  { %2869 = vmatpush3.bf16.msra.mxu1 %v3508_v40 }
 0x8a9   :  { %2870 = vmatprep.subr.bf16.mxu1 %v3165_v0 }
 0x8ac   :  { %2872 = vmatpush3.bf16.msra.mxu1 %v3512_v43 }
 0x8ad   :  { %2873 = vmatprep.subr.bf16.mxu1 %v3165_v0 }
 0x8b0   :  { %2875 = vmatpush3.bf16.msra.mxu1 %v3516_v46 }
 0x8b1   :  { %2876 = vmatprep.subr.bf16.mxu1 %v3165_v0 }
 0x8b4   :  { %2878 = vmatpush3.bf16.msra.mxu1 %v3520_v49 }
 0x8b5   :  { %2903 = vmatprep.subr.bf16.mxu1 %v3165_v0 }
 0x96a   :  { %v1097_v18 = vpop.f32.mrb[10].mxu1 }
 0x96b   :  { %v1098_v19 = vadd.f32 %v1097_v18, %v3541_v59  ;;  %v2324_v20 = vpop.f32.mrb[11].mxu1  ;;  %v1479_v59 = vld [vmem:[#allocation12 + $0x58] sm:$0xff] }
 0x96d   :  { %v1101_v21 = vadd.f32 %v3578_v6, %v1098_v19 }
 0x96f   :  { %3006 = vtanh.f32 %v1101_v21 }
 0x979   :  { %v3007_v22 = vpop.eup %3006 }
 0x97a   :  { %2358 = vmatmul.mubr.f32.vlgmr.msra.gmra.mrb[18].mxu0 %v3007_v22 }
 0x97b   :  { %2881 = vmatpush3.bf16.msra.mxu0 %v3492_v28  ;;  %2427 = vmatprep.mubr.msk.f32.mxu0 %vm3166_vm0, %v3167_v1 }
 0x97c   :  { %2882 = vmatprep.subr.bf16.mxu0 %v3165_v0 }
 0x97f   :  { %2884 = vmatpush3.bf16.msra.mxu0 %v3496_v31 }
 0x980   :  { %2885 = vmatprep.subr.bf16.mxu0 %v3165_v0 }
 0x983   :  { %2887 = vmatpush3.bf16.msra.mxu0 %v3500_v34 }
 0x984   :  { %2888 = vmatprep.subr.bf16.mxu0 %v3165_v0 }
 0x987   :  { %2890 = vmatpush3.bf16.msra.mxu0 %v3504_v37 }
 0x988   :  { %2891 = vmatprep.subr.bf16.mxu0 %v3165_v0 }
 0x98b   :  { %2893 = vmatpush3.bf16.msra.mxu0 %v3508_v40 }
 0x98c   :  { %2894 = vmatprep.subr.bf16.mxu0 %v3165_v0 }
 0x98f   :  { %2896 = vmatpush3.bf16.msra.mxu0 %v3512_v43 }
 0x990   :  { %2897 = vmatprep.subr.bf16.mxu0 %v3165_v0 }
 0x993   :  { %2899 = vmatpush3.bf16.msra.mxu0 %v3516_v46 }
 0x994   :  { %2900 = vmatprep.subr.bf16.mxu0 %v3165_v0 }
 0x997   :  { %2902 = vmatpush3.bf16.msra.mxu0 %v3520_v49 }
 0x998   :  { %2927 = vmatprep.subr.bf16.mxu0 %v3165_v0 }
 0xa4d   :  { %v1169_v23 = vpop.f32.mrb[18].mxu0 }
 0xa4e   :  { %v1170_v24 = vadd.f32 %v3539_v58, %v1169_v23  ;;  %v2359_v25 = vpop.f32.mrb[19].mxu0  ;;  %v1478_v58 = vld [vmem:[#allocation12 + $0x50] sm:$0xff] }
 0xa50   :  { %v1173_v26 = vadd.f32 %v3578_v6, %v1170_v24 }
 0xa52   :  { %3008 = vtanh.f32 %v1173_v26 }
 0xa5c   :  { %v3009_v29 = vpop.eup %3008 }
 0xa5d   :  { %2393 = vmatmul.mubr.f32.vlgmr.msra.gmra.mrb[12].mxu1 %v3009_v29 }
 0xa5e   :  { %2905 = vmatpush3.bf16.msra.mxu1 %v3492_v28  ;;  %2462 = vmatprep.mubr.msk.f32.mxu1 %vm3166_vm0, %v3167_v1 }
 0xa5f   :  { %2906 = vmatprep.subr.bf16.mxu1 %v3165_v0 }
 0xa62   :  { %2908 = vmatpush3.bf16.msra.mxu1 %v3496_v31 }
 0xa63   :  { %2909 = vmatprep.subr.bf16.mxu1 %v3165_v0 }
 0xa66   :  { %2911 = vmatpush3.bf16.msra.mxu1 %v3500_v34 }
 0xa67   :  { %2912 = vmatprep.subr.bf16.mxu1 %v3165_v0 }
 0xa6a   :  { %2914 = vmatpush3.bf16.msra.mxu1 %v3504_v37 }
 0xa6b   :  { %2915 = vmatprep.subr.bf16.mxu1 %v3165_v0 }
 0xa6e   :  { %2917 = vmatpush3.bf16.msra.mxu1 %v3508_v40 }
 0xa6f   :  { %2918 = vmatprep.subr.bf16.mxu1 %v3165_v0 }
 0xa72   :  { %2920 = vmatpush3.bf16.msra.mxu1 %v3512_v43 }
 0xa73   :  { %2921 = vmatprep.subr.bf16.mxu1 %v3165_v0 }
 0xa76   :  { %2923 = vmatpush3.bf16.msra.mxu1 %v3516_v46 }
 0xa77   :  { %2924 = vmatprep.subr.bf16.mxu1 %v3165_v0 }
 0xa7a   :  { %2926 = vmatpush3.bf16.msra.mxu1 %v3520_v49 }
 0xa7b   :  { %2951 = vmatprep.subr.bf16.mxu1 %v3165_v0 }
 0xb30   :  { %v1241_v30 = vpop.f32.mrb[12].mxu1 }
 0xb31   :  { %v1242_v32 = vadd.f32 %v1241_v30, %v3547_v61  ;;  %v2394_v33 = vpop.f32.mrb[13].mxu1  ;;  %v1480_v61 = vld [vmem:[#allocation12 + $0x60] sm:$0xff] }
 0xb32   :  { %v2970_v63 = vpack.c.bf16 %v1481_v62, %v1480_v61 }
 0xb33   :  { %v1245_v35 = vadd.f32 %v3578_v6, %v1242_v32 }
 0xb35   :  { %3010 = vtanh.f32 %v1245_v35 }
 0xb3f   :  { %v3011_v36 = vpop.eup %3010 }
 0xb40   :  { %2428 = vmatmul.mubr.f32.vlgmr.msra.gmra.mrb[20].mxu0 %v3011_v36 }
 0xb41   :  { %2929 = vmatpush3.bf16.msra.mxu0 %v3492_v28  ;;  %2497 = vmatprep.mubr.msk.f32.mxu0 %vm3166_vm0, %v3167_v1 }
 0xb42   :  { %2930 = vmatprep.subr.bf16.mxu0 %v3165_v0 }
 0xb45   :  { %2932 = vmatpush3.bf16.msra.mxu0 %v3496_v31 }
 0xb46   :  { %2933 = vmatprep.subr.bf16.mxu0 %v3165_v0 }
 0xb49   :  { %2935 = vmatpush3.bf16.msra.mxu0 %v3500_v34 }
 0xb4a   :  { %2936 = vmatprep.subr.bf16.mxu0 %v3165_v0 }
 0xb4d   :  { %2938 = vmatpush3.bf16.msra.mxu0 %v3504_v37 }
 0xb4e   :  { %2939 = vmatprep.subr.bf16.mxu0 %v3165_v0 }
 0xb51   :  { %2941 = vmatpush3.bf16.msra.mxu0 %v3508_v40  ;;  %v1469_v40 = vld [vmem:[#allocation12 + $0x8] sm:$0xff] }
 0xb52   :  { %2942 = vmatprep.subr.bf16.mxu0 %v3165_v0  ;;  %v2952_v42 = vpack.c.bf16 %v1469_v40, %v1468_v39 }
 0xb55   :  { %2944 = vmatpush3.bf16.msra.mxu0 %v3512_v43  ;;  %v1471_v43 = vld [vmem:[#allocation12 + $0x18] sm:$0xff] }
 0xb56   :  { %2945 = vmatprep.subr.bf16.mxu0 %v3165_v0  ;;  %v2955_v44 = vpack.c.bf16 %v1471_v43, %v1470_v41 }
 0xb59   :  { %2947 = vmatpush3.bf16.msra.mxu0 %v3516_v46  ;;  %v1473_v46 = vld [vmem:[#allocation12 + $0x28] sm:$0xff] }
 0xb5a   :  { %2948 = vmatprep.subr.bf16.mxu0 %v3165_v0  ;;  %v2958_v47 = vpack.c.bf16 %v1473_v46, %v1472_v45 }
 0xb5d   :  { %2950 = vmatpush3.bf16.msra.mxu0 %v3520_v49  ;;  %v1475_v49 = vld [vmem:[#allocation12 + $0x38] sm:$0xff] }
 0xb5e   :  { %v2961_v50 = vpack.c.bf16 %v1475_v49, %v1474_v48 }
 0xc13   :  { %v1313_v28 = vpop.f32.mrb[20].mxu0 }
 0xc14   :  { %v1314_v31 = vadd.f32 %v3545_v60, %v1313_v28  ;;  %v2429_v34 = vpop.f32.mrb[21].mxu0  ;;  %v2967_v60 = vpack.c.bf16 %v1479_v59, %v1478_v58 }
 0xc16   :  { %v1317_v37 = vadd.f32 %v3578_v6, %v1314_v31 }
 0xc18   :  { %3012 = vtanh.f32 %v1317_v37 }
 0xc22   :  { %v3013_v38 = vpop.eup %3012 }
 0xc23   :  { %2463 = vmatmul.mubr.f32.vlgmr.msra.gmra.mrb[14].mxu1 %v3013_v38 }
 0xc24   :  { %2532 = vmatprep.mubr.msk.f32.mxu1 %vm3166_vm0, %v3167_v1  ;;  %2953 = vmatpush3.bf16.msra.mxu1 %v2952_v42 }
 0xc25   :  { %2954 = vmatprep.subr.bf16.mxu1 %v3165_v0 }
 0xc28   :  { %2956 = vmatpush3.bf16.msra.mxu1 %v2955_v44 }
 0xc29   :  { %2957 = vmatprep.subr.bf16.mxu1 %v3165_v0 }
 0xc2c   :  { %2959 = vmatpush3.bf16.msra.mxu1 %v2958_v47 }
 0xc2d   :  { %2960 = vmatprep.subr.bf16.mxu1 %v3165_v0 }
 0xc30   :  { %2962 = vmatpush3.bf16.msra.mxu1 %v2961_v50 }
 0xc31   :  { %2963 = vmatprep.subr.bf16.mxu1 %v3165_v0 }
 0xc34   :  { %2965 = vmatpush3.bf16.msra.mxu1 %v2964_v57 }
 0xc35   :  { %2966 = vmatprep.subr.bf16.mxu1 %v3165_v0 }
 0xc38   :  { %2968 = vmatpush3.bf16.msra.mxu1 %v2967_v60 }
 0xc39   :  { %2969 = vmatprep.subr.bf16.mxu1 %v3165_v0 }
 0xc3c   :  { %2971 = vmatpush3.bf16.msra.mxu1 %v2970_v63 }
 0xc3d   :  { %2972 = vmatprep.subr.bf16.mxu1 %v3165_v0 }
 0xc40   :  { %2974 = vmatpush3.bf16.msra.mxu1 %v2973_v4 }
 0xcf6   :  { %v1385_v1 = vpop.f32.mrb[14].mxu1 }
 0xcf7   :  { %v1386_v51 = vadd.f32 %v1385_v1, %v3601_v12  ;;  %v2464_v52 = vpop.f32.mrb[15].mxu1 }
 0xcf9   :  { %v1389_v53 = vadd.f32 %v3578_v6, %v1386_v51 }
 0xcfb   :  { %3014 = vtanh.f32 %v1389_v53 }
 0xd05   :  { %v3015_v54 = vpop.eup %3014 }
 0xd06   :  { %2498 = vmatmul.mubr.f32.vlgmr.msra.gmra.mrb[22].mxu0 %v3015_v54 }
 0xdd9   :  { %v1457_v5 = vpop.f32.mrb[22].mxu0 }
 0xdda   :  { %v1458_v7 = vadd.f32 %v3599_v27, %v1457_v5  ;;  %v2499_v8 = vpop.f32.mrb[23].mxu0 }
 0xddc   :  { %v1461_v9 = vadd.f32 %v3578_v6, %v1458_v7 }
 0xdde   :  { %3016 = vtanh.f32 %v1461_v9 }
 0xde8   :  { %v3017_v10 = vpop.eup %3016 }
 0xde9   :  { %2533 = vmatmul.mubr.f32.vlgmr.msra.gmra.mrb[16].mxu1 %v3017_v10 }
 0xebc   :  { %v1557_v12 = vpop.f32.mrb[16].mxu1 }
 0xebd   :  { %v1558_v13 = vadd.f32 %v1582_v11, %v1557_v12  ;;  %v2534_v14 = vpop.f32.mrb[17].mxu1 }
 0xebf   :  { %1561 = vst [vmem:[#allocation13] sm:$0xff] %v1558_v13 }
 0xec0   :  { %3139 = shalt.err (!%p3136_p2)
}
 0xec1   :  { %s3140_s22 = scalar_lea.hbm %s3719_s7, 128 }
 0xec2   :  { %p3141_p3 = scmp.ne.s32.totalorder %s3719_s7, %s3140_s22  ;;  %p3144_p4 = scmp.lt.u32.totalorder %s3140_s22, %s3719_s7 }
 0xec4   :  { %p3146_p5 = pnand %p3144_p4, %p3141_p3 }
 0xec6   :  { %3149 = shalt.err (!%p3146_p5)
}
 0xec7   :  { %1571 = dma.vmem_to_hbm [thread:$0]  %s1569_s18, 128, %s3719_s7, [#allocation6]  }
 0xec8   :  { %3156 = dma.done.wait [#allocation6], 128  }
 0xec9   :  { %3157 = vsyncadd [#allocation6], 4294967168 }
 0xeca   :  { %1575 = vsyncpa [#allocation5], 1 }
 0xecb   :  { %1576 = vsyncpa [#allocation8], 1 }
 0xecc   :  { %1577 = vsyncpa [#allocation11], 1 }
 0xecd   :  { %1578 = vsyncpa [#allocation6], 1 }

</bundles_post_ra>
